<compile_context>
chip_gen: v6e
topology: v6e:2x2x1
jax: 0.10.0
libtpu: 0.0.40
codegen_flags: <defaults>
</compile_context>

<pallas_src>
import functools

import jax
import jax.numpy as jnp
from jax.experimental import pallas as pl
from jax.experimental.pallas import tpu as pltpu

EXPAND = 6
LANE = 128
WL = 8                      # left column margin of the r1 scratch (f32 sublane-aligned)


# ---------------------------------------------------------------------------
# small helpers
# ---------------------------------------------------------------------------
def _round_up(n, m=LANE):
    return ((n + m - 1) // m) * m


def _pick_tile(n, target, mult=1):
    """Largest divisor of n that is <= target and a multiple of `mult`
    (falls back to the full dim, which is always a legal block size)."""
    target = max(1, min(target, n))
    for t in range(target, 0, -1):
        if n % t == 0 and (t % mult == 0 or t == n):
            return t
    return n


def _pad_last(a, size):
    pad = [(0, 0)] * (a.ndim - 1) + [(0, size - a.shape[-1])]
    return jnp.pad(a, pad)


def _pad2(a, rows, cols):
    return jnp.pad(a, ((0, rows - a.shape[0]), (0, cols - a.shape[1])))


# ---------------------------------------------------------------------------
# Kernel 1: fused expansion (1x1 conv + folded BN + Swish)
#           + depthwise kxk (stride 1, SAME, folded BN + Swish)
#           + per-strip SE-pool partial sum (both grid axes 'parallel')
# ---------------------------------------------------------------------------
def _make_fused_expand_dw_kernel(k, th, ws, multi):
    pad = k // 2
    wl = WL

    def body(xc_ref, xp_ref, xn_ref, w1_ref, b1_ref, wdw_ref, b2_ref,
             r2_ref, pool_ref, r1_scr):
        i = pl.program_id(1)
        n_strips = pl.num_programs(1)
        cexp_p = r1_scr.shape[-1]

        w1 = w1_ref[...]                              # (Cin_p, Cexp_p) bf16, BN folded
        b1 = b1_ref[...].reshape(1, 1, -1)            # (1, 1, Cexp_p) f32

        def expand(x3):                               # (R, Ws, Cin_p) bf16 -> swished f32
            y = jnp.einsum("hwc,cd->hwd", x3, w1,
                           preferred_element_type=jnp.float32) + b1
            return y * jax.nn.sigmoid(y)

        # (Re)write only the SAME-padding regions the depthwise window reads
        # (interior is fully overwritten every step; columns [0, wl-pad) unread).
        zcol = jnp.zeros((th + 2 * pad, pad, cexp_p), r1_scr.dtype)
        r1_scr[:, wl - pad:wl, :] = zcol
        r1_scr[:, wl + ws:wl + ws + pad, :] = zcol

        # current strip: sublane-aligned (unmasked) store at column offset wl.
        r1_scr[pad:pad + th, wl:wl + ws, :] = expand(xc_ref[0])

        zrow = jnp.zeros((pad, ws, cexp_p), r1_scr.dtype)
        if multi:
            # top halo: zeros at the image border, else last `pad` rows of strip i-1
            @pl.when(i == 0)
            def _():
                r1_scr[0:pad, wl:wl + ws, :] = zrow

            @pl.when(i > 0)
            def _():
                r1_scr[0:pad, wl:wl + ws, :] = expand(xp_ref[0])

            # bottom halo: zeros at the image border, else first `pad` rows of strip i+1
            @pl.when(i == n_strips - 1)
            def _():
                r1_scr[pad + th:pad + th + pad, wl:wl + ws, :] = zrow

            @pl.when(i < n_strips - 1)
            def _():
                r1_scr[pad + th:pad + th + pad, wl:wl + ws, :] = expand(xn_ref[0])
        else:
            r1_scr[0:pad, wl:wl + ws, :] = zrow
            r1_scr[pad + th:pad + th + pad, wl:wl + ws, :] = zrow

        # depthwise k x k conv (stride 1, SAME) + folded BN + Swish.
        # Two independent partial accumulators break the serial add dependency.
        wdw = wdw_ref[...]                            # (k*k, Cexp_p) f32
        b2 = b2_ref[...].reshape(1, 1, -1)
        acc0 = None
        acc1 = None
        for idx in range(k * k):
            dh, dw = divmod(idx, k)
            c0 = wl - pad + dw
            tap = r1_scr[dh:dh + th, c0:c0 + ws, :] * wdw[idx]
            if idx % 2 == 0:
                acc0 = tap if acc0 is None else acc0 + tap
            else:
                acc1 = tap if acc1 is None else acc1 + tap
        y2 = acc0 + acc1 + b2
        r2 = y2 * jax.nn.sigmoid(y2)
        r2_ref[...] = r2[None].astype(r2_ref.dtype)

        # per-strip partial sum for the SE global-average pool (no cross-strip
        # accumulation -> strip axis stays 'parallel'; summed in the SE kernel).
        pool_ref[...] = jnp.sum(r2, axis=(0, 1), keepdims=True)

    if multi:
        def kernel(xp_ref, xc_ref, xn_ref, w1_ref, b1_ref, wdw_ref, b2_ref,
                   r2_ref, pool_ref, r1_scr):
            body(xc_ref, xp_ref, xn_ref, w1_ref, b1_ref, wdw_ref, b2_ref,
                 r2_ref, pool_ref, r1_scr)
    else:
        def kernel(xc_ref, w1_ref, b1_ref, wdw_ref, b2_ref,
                   r2_ref, pool_ref, r1_scr):
            body(xc_ref, None, None, w1_ref, b1_ref, wdw_ref, b2_ref,
                 r2_ref, pool_ref, r1_scr)
    return kernel


# ---------------------------------------------------------------------------
# Kernel 2: tiny SE MLP (sums the per-strip pool partials; 1/S folded into w1)
# ---------------------------------------------------------------------------
def _se_kernel(pool_ref, w1_ref, b1_ref, w2_ref, b2_ref, gate_ref):
    p = jnp.sum(pool_ref[...], axis=1, keepdims=True).astype(jnp.bfloat16)  # (B,1,Cexp_p)
    h = jnp.einsum("bxc,cd->bxd", p, w1_ref[...],
                   preferred_element_type=jnp.float32) + b1_ref[...]
    h = h * jax.nn.sigmoid(h)
    g = jnp.einsum("bxc,cd->bxd", h.astype(jnp.bfloat16), w2_ref[...],
                   preferred_element_type=jnp.float32) + b2_ref[...]
    gate_ref[...] = jax.nn.sigmoid(g)


# ---------------------------------------------------------------------------
# Kernel 3: SE gating (bf16) + 1x1 projection (tall bf16 MXU matmul)
#           + folded BN bias (+ optional bf16 shortcut add)
# ---------------------------------------------------------------------------
def _make_proj_kernel(use_shortcut):
    if use_shortcut:
        def kernel(r2_ref, gate_ref, wp_ref, b3_ref, sc_ref, o_ref):
            g = gate_ref[0].astype(jnp.bfloat16)                   # (1, Cexp_p)
            y = jnp.dot(r2_ref[0] * g, wp_ref[...],
                        preferred_element_type=jnp.float32)
            o_ref[...] = (y + b3_ref[...] + sc_ref[0].astype(jnp.float32))[None]
    else:
        def kernel(r2_ref, gate_ref, wp_ref, b3_ref, o_ref):
            g = gate_ref[0].astype(jnp.bfloat16)
            y = jnp.dot(r2_ref[0] * g, wp_ref[...],
                        preferred_element_type=jnp.float32)
            o_ref[...] = (y + b3_ref[...])[None]
    return kernel


# ---------------------------------------------------------------------------
# Parameter construction (deterministic, synthetic), BN folding
# ---------------------------------------------------------------------------
def _fold_bn(gamma, beta, mean, var, eps=0.001):
    scale = gamma / jnp.sqrt(var + eps)
    bias = beta - mean * scale
    return scale[None, :], bias[None, :]


def init_mbconv_params(key, in_channels, out_channels, kernel_size, se_scale=4):
    c_exp = in_channels * EXPAND
    hidden = c_exp * se_scale
    keys = jax.random.split(key, 12)

    def bn_params(k, c):
        k0, k1, k2, k3 = jax.random.split(k, 4)
        gamma = 1.0 + 0.1 * jax.random.normal(k0, (c,), jnp.float32)
        beta = 0.1 * jax.random.normal(k1, (c,), jnp.float32)
        mean = 0.1 * jax.random.normal(k2, (c,), jnp.float32)
        var = jnp.abs(1.0 + 0.1 * jax.random.normal(k3, (c,), jnp.float32))
        return _fold_bn(gamma, beta, mean, var)

    p = {}
    # expansion 1x1 conv: torch weight (C_exp, C_in, 1, 1) -> (C_in, C_exp)
    p["w_expand"] = 0.1 * jax.random.normal(keys[0], (in_channels, c_exp), jnp.float32)
    p["bn1_scale"], p["bn1_bias"] = bn_params(keys[1], c_exp)
    # depthwise conv: torch weight (C_exp, 1, k, k) -> (k*k, C_exp)
    p["w_dw"] = 0.1 * jax.random.normal(
        keys[2], (kernel_size * kernel_size, c_exp), jnp.float32)
    p["bn2_scale"], p["bn2_bias"] = bn_params(keys[3], c_exp)
    # SE MLP: Linear(C_exp, hidden), Linear(hidden, C_exp)
    p["se_w1"] = 0.1 * jax.random.normal(keys[4], (c_exp, hidden), jnp.float32)
    p["se_b1"] = 0.1 * jax.random.normal(keys[5], (1, hidden), jnp.float32)
    p["se_w2"] = 0.1 * jax.random.normal(keys[6], (hidden, c_exp), jnp.float32)
    p["se_b2"] = 0.1 * jax.random.normal(keys[7], (1, c_exp), jnp.float32)
    # projection 1x1 conv: torch weight (C_out, C_exp, 1, 1) -> (C_exp, C_out)
    p["w_proj"] = 0.1 * jax.random.normal(keys[8], (c_exp, out_channels), jnp.float32)
    p["bn3_scale"], p["bn3_bias"] = bn_params(keys[9], out_channels)
    return p


# ---------------------------------------------------------------------------
# Forward glue
# ---------------------------------------------------------------------------
def _mbconv_nhwc_padded(x_nchw, params, *, kernel_size, stride, row_tile,
                        spatial_tile):
    b, c_in, _, _ = x_nchw.shape
    c_exp = params["w_expand"].shape[1]
    c_out = params["w_proj"].shape[1]
    hid = params["se_w1"].shape[1]
    k = kernel_size
    pad = k // 2
    assert k % 2 == 1 and k >= 3
    use_shortcut = (stride == 1) and (c_in == c_out)

    cin_p, cexp_p, cout_p, hid_p = (_round_up(c) for c in (c_in, c_exp, c_out, hid))

    # 1x1 conv with stride s and padding 0 == spatial subsampling, then 1x1 conv
    # (matches the reference: the stride sits on the expansion conv).
    xs = x_nchw[:, :, ::stride, ::stride]
    hs, ws = xs.shape[2], xs.shape[3]
    s = hs * ws

    x_nhwc = jnp.transpose(xs, (0, 2, 3, 1)).astype(jnp.float32)
    x_bf = _pad_last(x_nhwc, cin_p).astype(jnp.bfloat16)           # (B, Hs, Ws, Cin_p)

    # Fold eval-mode BN scales into the conv weights (only bias adds in-kernel);
    # MXU weights in bf16 (f32 accumulation), VPU-side weights/biases in f32.
    w1 = _pad2(params["w_expand"] * params["bn1_scale"], cin_p, cexp_p).astype(jnp.bfloat16)
    b1 = _pad_last(params["bn1_bias"], cexp_p)
    wdw = _pad_last(params["w_dw"] * params["bn2_scale"], cexp_p)
    b2 = _pad_last(params["bn2_bias"], cexp_p)
    wp = _pad2(params["w_proj"] * params["bn3_scale"], cexp_p, cout_p).astype(jnp.bfloat16)
    b3 = _pad_last(params["bn3_bias"], cout_p)
    # SE: fold the global-average-pool divisor 1/S into the first linear weight.
    sw1 = _pad2(params["se_w1"] * (1.0 / s), cexp_p, hid_p).astype(jnp.bfloat16)
    sb1 = _pad_last(params["se_b1"], hid_p)
    sw2 = _pad2(params["se_w2"], hid_p, cexp_p).astype(jnp.bfloat16)
    sb2 = _pad_last(params["se_b2"], cexp_p)

    # Row-strip size: budget the full per-step VMEM working set (f32 scratch +
    # double-buffered input/r2 blocks + f32 depthwise accumulators).  ~12 MiB
    # amortizes grid overhead on v5e/v6e while staying well inside v7x's 64 MiB.
    if row_tile is None:
        budget = 12 * 1024 * 1024
        fixed = 2 * pad * (WL + ws + pad) * cexp_p * 4
        per_row = ((WL + ws + pad) * cexp_p * 4        # f32 r1 scratch
                   + 2 * ws * cin_p * 2                # double-buffered input block
                   + 2 * ws * cexp_p * 2               # double-buffered bf16 r2 block
                   + 3 * ws * cexp_p * 4)              # f32 depthwise partial accs
        row_tile = max(pad, (budget - fixed) // per_row)
    th = _pick_tile(hs, row_tile, mult=pad)            # halo blocks need th % pad == 0
    n_strips = hs // th
    multi = n_strips > 1

    kernel1 = _make_fused_expand_dw_kernel(k, th, ws, multi)

    w_specs = [
        pl.BlockSpec((cin_p, cexp_p), lambda bi, i: (0, 0)),
        pl.BlockSpec((1, cexp_p), lambda bi, i: (0, 0)),
        pl.BlockSpec((k * k, cexp_p), lambda bi, i: (0, 0)),
        pl.BlockSpec((1, cexp_p), lambda bi, i: (0, 0)),
    ]
    if multi:
        strips_per = th // pad              # pad-row halo blocks per strip
        n_hblocks = hs // pad
        in_specs = [
            # prev-strip halo: last `pad` rows of strip i-1 (clamped at the top border)
            pl.BlockSpec((1, pad, ws, cin_p),
                         lambda bi, i: (bi, jnp.maximum(i * strips_per - 1, 0), 0, 0)),
            # current strip
            pl.BlockSpec((1, th, ws, cin_p), lambda bi, i: (bi, i, 0, 0)),
            # next-strip halo: first `pad` rows of strip i+1 (clamped at the bottom)
            pl.BlockSpec((1, pad, ws, cin_p),
                         lambda bi, i: (bi, jnp.minimum((i + 1) * strips_per,
                                                        n_hblocks - 1), 0, 0)),
        ] + w_specs
        k1_args = (x_bf, x_bf, x_bf, w1, b1, wdw, b2)
    else:
        in_specs = [pl.BlockSpec((1, th, ws, cin_p),
                                 lambda bi, i: (bi, i, 0, 0))] + w_specs
        k1_args = (x_bf, w1, b1, wdw, b2)

    cost1 = pl.CostEstimate(
        flops=int(2 * b * hs * ws * cin_p * cexp_p
                  + b * hs * ws * cexp_p * (2 * k * k + 10)),
        transcendentals=int(2 * b * hs * ws * cexp_p),
        bytes_accessed=int(b * hs * ws * (cin_p + cexp_p) * 2
                           + (cin_p + k * k + 2) * cexp_p * 4))

    r2, pooled = pl.pallas_call(
        kernel1,
        out_shape=(jax.ShapeDtypeStruct((b, hs, ws, cexp_p), jnp.bfloat16),
                   jax.ShapeDtypeStruct((b * n_strips, 1, cexp_p), jnp.float32)),
        grid_spec=pltpu.PrefetchScalarGridSpec(
            num_scalar_prefetch=0,
            grid=(b, n_strips),
            in_specs=in_specs,
            out_specs=[
                pl.BlockSpec((1, th, ws, cexp_p), lambda bi, i: (bi, i, 0, 0)),
                pl.BlockSpec((1, 1, cexp_p),
                             lambda bi, i: (bi * n_strips + i, 0, 0)),
            ],
            scratch_shapes=[
                pltpu.VMEM((th + 2 * pad, WL + ws + pad, cexp_p), jnp.float32)],
        ),
        compiler_params=pltpu.CompilerParams(
            dimension_semantics=("parallel", "parallel"),
            vmem_limit_bytes=48 * 1024 * 1024),
        cost_estimate=cost1,
    )(*k1_args)

    # tiny SE MLP (single block); sums the per-strip pool partials.
    gate = pl.pallas_call(
        _se_kernel,
        out_shape=jax.ShapeDtypeStruct((b, 1, cexp_p), jnp.float32),
    )(pooled.reshape(b, n_strips, cexp_p), sw1, sb1, sw2, sb2)

    # SE gating + projection as a tall lane-dense bf16 matmul, tiled over (batch, spatial)
    ts = _pick_tile(s, spatial_tile, mult=16)          # 16: bf16 sublane packing
    n_tiles = s // ts
    r2_flat = r2.reshape(b, s, cexp_p)

    in_specs3 = [
        pl.BlockSpec((1, ts, cexp_p), lambda bi, t: (bi, t, 0)),
        pl.BlockSpec((1, 1, cexp_p), lambda bi, t: (bi, 0, 0)),
        pl.BlockSpec((cexp_p, cout_p), lambda bi, t: (0, 0)),
        pl.BlockSpec((1, cout_p), lambda bi, t: (0, 0)),
    ]
    args3 = [r2_flat, gate, wp, b3]
    if use_shortcut:
        # reuse the already-padded bf16 input (cin_p == cout_p on the shortcut path)
        in_specs3.append(pl.BlockSpec((1, ts, cout_p), lambda bi, t: (bi, t, 0)))
        args3.append(x_bf.reshape(b, s, cin_p))

    cost3 = pl.CostEstimate(
        flops=int(2 * b * s * cexp_p * cout_p + b * s * cexp_p),
        transcendentals=0,
        bytes_accessed=int(b * s * cexp_p * 2 + b * s * cout_p * 4
                           + cexp_p * cout_p * 2
                           + (b * s * cout_p * 2 if use_shortcut else 0)))

    out3 = pl.pallas_call(
        _make_proj_kernel(use_shortcut),
        out_shape=jax.ShapeDtypeStruct((b, s, cout_p), jnp.float32),
        grid_spec=pltpu.PrefetchScalarGridSpec(
            num_scalar_prefetch=0,
            grid=(b, n_tiles),
            in_specs=in_specs3,
            out_specs=pl.BlockSpec((1, ts, cout_p), lambda bi, t: (bi, t, 0)),
        ),
        compiler_params=pltpu.CompilerParams(
            dimension_semantics=("parallel", "parallel"),
            vmem_limit_bytes=48 * 1024 * 1024),
        cost_estimate=cost3,
    )(*args3)

    return out3.reshape(b, hs, ws, cout_p)             # padded NHWC (channels -> cout_p)


@functools.partial(jax.jit,
                   static_argnames=("kernel_size", "stride", "row_tile", "spatial_tile"))
def mbconv_forward_nhwc(x_nchw, params, *, kernel_size, stride,
                        row_tile=None, spatial_tile=1024):
    """NHWC output with channels zero-padded to a multiple of 128 — chain-friendly
    (a following block can consume this directly, skipping the slice/transpose pass)."""
    return _mbconv_nhwc_padded(x_nchw, params, kernel_size=kernel_size, stride=stride,
                               row_tile=row_tile, spatial_tile=spatial_tile)


@functools.partial(jax.jit,
                   static_argnames=("kernel_size", "stride", "row_tile", "spatial_tile"))
def mbconv_forward(x_nchw, params, *, kernel_size, stride,
                   row_tile=None, spatial_tile=1024):
    """PyTorch-convention NCHW output (costs an extra slice + transpose pass over HBM;
    prefer mbconv_forward_nhwc when chaining blocks)."""
    y = _mbconv_nhwc_padded(x_nchw, params, kernel_size=kernel_size, stride=stride,
                            row_tile=row_tile, spatial_tile=spatial_tile)
    c_out = params["w_proj"].shape[1]
    return jnp.transpose(y[..., :c_out], (0, 3, 1, 2))


# ---------------------------------------------------------------------------
# Pure-JAX reference (mirrors the PyTorch eval forward) for validation
# ---------------------------------------------------------------------------
@functools.partial(jax.jit, static_argnames=("kernel_size", "stride"))
def reference_forward(x_nchw, params, *, kernel_size, stride):
    k = kernel_size
    pad = k // 2
    c_in = x_nchw.shape[1]
    c_out = params["w_proj"].shape[1]
    use_shortcut = (stride == 1) and (c_in == c_out)

    xs = x_nchw[:, :, ::stride, ::stride]
    x = jnp.transpose(xs, (0, 2, 3, 1)).astype(jnp.float32)        # NHWC
    hs, ws = x.shape[1], x.shape[2]

    r1 = jnp.einsum("bhwc,cd->bhwd", x, params["w_expand"])
    r1 = r1 * params["bn1_scale"] + params["bn1_bias"]
    r1 = r1 * jax.nn.sigmoid(r1)

    r1p = jnp.pad(r1, ((0, 0), (pad, pad), (pad, pad), (0, 0)))
    acc = jnp.zeros_like(r1)
    for dh in range(k):
        for dw in range(k):
            acc = acc + r1p[:, dh:dh + hs, dw:dw + ws, :] * params["w_dw"][dh * k + dw]
    r2 = acc * params["bn2_scale"] + params["bn2_bias"]
    r2 = r2 * jax.nn.sigmoid(r2)

    pooled = jnp.mean(r2, axis=(1, 2))
    h1 = pooled @ params["se_w1"] + params["se_b1"]
    h1 = h1 * jax.nn.sigmoid(h1)
    gate = jax.nn.sigmoid(h1 @ params["se_w2"] + params["se_b2"])

    y = jnp.einsum("bhwc,cd->bhwd", r2 * gate[:, None, None, :], params["w_proj"])
    y = y * params["bn3_scale"] + params["bn3_bias"]
    if use_shortcut:
        y = y + x
    return jnp.transpose(y, (0, 3, 1, 2))


if __name__ == "__main__":
    key = jax.random.PRNGKey(0)
    k_x, k_p1, k_p2, k_p3 = jax.random.split(key, 4)

    B, C_IN, H, W = 2, 4, 16, 16
    x = jax.random.normal(k_x, (B, C_IN, H, W), jnp.float32)
    TOL = 4e-2          # bf16 MXU matmuls + bf16 r2/gate/shortcut storage

    # Config 1: stride 1, C_in == C_out -> shortcut path; row_tile=8 exercises
    # the pad=1 multi-strip halo path of the fused kernel.
    params = init_mbconv_params(k_p1, C_IN, 4, 3, 4)
    y = jax.block_until_ready(
        mbconv_forward(x, params, kernel_size=3, stride=1, row_tile=8))
    assert y.shape == (B, 4, H, W), y.shape
    y_ref = reference_forward(x, params, kernel_size=3, stride=1)
    err1 = float(jnp.max(jnp.abs(y - y_ref)))
    assert err1 < TOL, f"config1 max abs err {err1}"

    # Config 2: stride 2, C_in != C_out -> no shortcut, k=5, single-strip path.
    params2 = init_mbconv_params(k_p2, C_IN, 8, 5, 4)
    y2 = jax.block_until_ready(
        mbconv_forward(x, params2, kernel_size=5, stride=2))
    assert y2.shape == (B, 8, H // 2, W // 2), y2.shape
    y2_ref = reference_forward(x, params2, kernel_size=5, stride=2)
    err2 = float(jnp.max(jnp.abs(y2 - y2_ref)))
    assert err2 < TOL, f"config2 max abs err {err2}"

    # Config 3: k=5, stride 1, shortcut; row_tile=4 exercises the pad=2
    # multi-strip halo path.
    params3 = init_mbconv_params(k_p3, C_IN, 4, 5, 4)
    y3 = jax.block_until_ready(
        mbconv_forward(x, params3, kernel_size=5, stride=1, row_tile=4))
    assert y3.shape == (B, 4, H, W), y3.shape
    y3_ref = reference_forward(x, params3, kernel_size=5, stride=1)
    err3 = float(jnp.max(jnp.abs(y3 - y3_ref)))
    assert err3 < TOL, f"config3 max abs err {err3}"

    print("KERNEL_OK")
</pallas_src>

<mosaic_0001>
module attributes {stable_mosaic.version = 11 : i64} {
  func.func @kernel(%arg0: i32, %arg1: i32, %arg2: memref<1x1x16x128xbf16, #tpu.memory_space<vmem>>, %arg3: memref<1x8x16x128xbf16, #tpu.memory_space<vmem>>, %arg4: memref<1x1x16x128xbf16, #tpu.memory_space<vmem>>, %arg5: memref<128x128xbf16, #tpu.memory_space<vmem>>, %arg6: memref<1x128xf32, #tpu.memory_space<vmem>>, %arg7: memref<9x128xf32, #tpu.memory_space<vmem>>, %arg8: memref<1x128xf32, #tpu.memory_space<vmem>>, %arg9: memref<1x8x16x128xbf16, #tpu.memory_space<vmem>>, %arg10: memref<1x1x128xf32, #tpu.memory_space<vmem>>, %arg11: memref<10x25x128xf32, #tpu.memory_space<vmem>>) attributes {dimension_semantics = [#tpu.dimension_semantics<parallel>, #tpu.dimension_semantics<parallel>], iteration_bounds = array<i64: 2, 2>, scalar_prefetch = 0 : i64, scratch_operands = 1 : i64, tpu.core_type = #tpu.core_type<tc>, window_params = [{transform_indices = @transform_0, window_bounds = array<i64: 1, 1, 16, 128>}, {transform_indices = @transform_1, window_bounds = array<i64: 1, 8, 16, 128>}, {transform_indices = @transform_2, window_bounds = array<i64: 1, 1, 16, 128>}, {pipeline_mode = #tpu.pipeline_mode<synchronous>, transform_indices = @transform_3, window_bounds = array<i64: 128, 128>}, {pipeline_mode = #tpu.pipeline_mode<synchronous>, transform_indices = @transform_4, window_bounds = array<i64: 1, 128>}, {pipeline_mode = #tpu.pipeline_mode<synchronous>, transform_indices = @transform_5, window_bounds = array<i64: 9, 128>}, {pipeline_mode = #tpu.pipeline_mode<synchronous>, transform_indices = @transform_6, window_bounds = array<i64: 1, 128>}, {transform_indices = @transform_7, window_bounds = array<i64: 1, 8, 16, 128>}, {transform_indices = @transform_8, window_bounds = array<i64: 1, 1, 128>}]} {
    %c0 = arith.constant 0 : index
    %c0_0 = arith.constant 0 : index
    %0 = vector.load %arg5[%c0, %c0_0] : memref<128x128xbf16, #tpu.memory_space<vmem>>, vector<128x128xbf16>
    %c0_1 = arith.constant 0 : index
    %c0_2 = arith.constant 0 : index
    %1 = vector.load %arg6[%c0_1, %c0_2] : memref<1x128xf32, #tpu.memory_space<vmem>>, vector<1x128xf32>
    %2 = vector.shape_cast %1 : vector<1x128xf32> to vector<1x1x128xf32>
    %cst = arith.constant 0.000000e+00 : f32
    %3 = vector.broadcast %cst : f32 to vector<10x1x128xf32>
    %c0_3 = arith.constant 0 : index
    %c7 = arith.constant 7 : index
    %c0_4 = arith.constant 0 : index
    %4 = vector.load %arg11[%c0_3, %c7, %c0_4] : memref<10x25x128xf32, #tpu.memory_space<vmem>>, vector<10x1x128xf32>
    tpu.vector_store %arg11[%c0_3, %c7, %c0_4], %3 {strides = array<i32>} : memref<10x25x128xf32, #tpu.memory_space<vmem>>, vector<10x1x128xf32>,
    %c0_5 = arith.constant 0 : index
    %c24 = arith.constant 24 : index
    %c0_6 = arith.constant 0 : index
    %5 = vector.load %arg11[%c0_5, %c24, %c0_6] : memref<10x25x128xf32, #tpu.memory_space<vmem>>, vector<10x1x128xf32>
    tpu.vector_store %arg11[%c0_5, %c24, %c0_6], %3 {strides = array<i32>} : memref<10x25x128xf32, #tpu.memory_space<vmem>>, vector<10x1x128xf32>,
    %c0_7 = arith.constant 0 : index
    %c0_8 = arith.constant 0 : index
    %c0_9 = arith.constant 0 : index
    %c0_10 = arith.constant 0 : index
    %6 = vector.load %arg3[%c0_7, %c0_8, %c0_9, %c0_10] : memref<1x8x16x128xbf16, #tpu.memory_space<vmem>>, vector<1x8x16x128xbf16>
    %7 = vector.shape_cast %6 : vector<1x8x16x128xbf16> to vector<8x16x128xbf16>
    "tpu.trace_start"() <{level = 10 : i32, message = "hwc,cd->hwd"}> : () -> ()
    %cst_11 = arith.constant dense<0.000000e+00> : vector<8x16x128xf32>
    %8 = tpu.matmul %7, %0, %cst_11 {dimension_numbers = #tpu.dot_dimension_numbers<[2], [0], [0, 1], [1], [0, 0, 0, 1, 1, 1], [], []>} : vector<8x16x128xbf16>, vector<128x128xbf16>, vector<8x16x128xf32> -> vector<8x16x128xf32>
    "tpu.trace_stop"() : () -> ()
    %9 = vector.broadcast %2 : vector<1x1x128xf32> to vector<8x16x128xf32>
    %10 = arith.addf %8, %9 : vector<8x16x128xf32>
    %11 = arith.negf %10 : vector<8x16x128xf32>
    %12 = math.exp %11 : vector<8x16x128xf32>
    %cst_12 = arith.constant 1.000000e+00 : f32
    %13 = vector.broadcast %cst_12 : f32 to vector<8x16x128xf32>
    %14 = arith.addf %13, %12 : vector<8x16x128xf32>
    %15 = arith.divf %13, %14 : vector<8x16x128xf32>
    %16 = arith.mulf %10, %15 : vector<8x16x128xf32>
    %c1 = arith.constant 1 : index
    %c8 = arith.constant 8 : index
    %c0_13 = arith.constant 0 : index
    %17 = vector.load %arg11[%c1, %c8, %c0_13] : memref<10x25x128xf32, #tpu.memory_space<vmem>>, vector<8x16x128xf32>
    tpu.vector_store %arg11[%c1, %c8, %c0_13], %16 {strides = array<i32>} : memref<10x25x128xf32, #tpu.memory_space<vmem>>, vector<8x16x128xf32>,
    %cst_14 = arith.constant 0.000000e+00 : f32
    %18 = vector.broadcast %cst_14 : f32 to vector<1x16x128xf32>
    %c0_i32 = arith.constant 0 : i32
    %19 = arith.cmpi eq, %arg1, %c0_i32 : i32
    %20 = arith.extui %19 : i1 to i32
    %c0_i32_15 = arith.constant 0 : i32
    %21 = arith.cmpi ne, %20, %c0_i32_15 : i32
    scf.if %21 {
      %c0_59 = arith.constant 0 : index
      %c8_60 = arith.constant 8 : index
      %c0_61 = arith.constant 0 : index
      %110 = vector.load %arg11[%c0_59, %c8_60, %c0_61] : memref<10x25x128xf32, #tpu.memory_space<vmem>>, vector<1x16x128xf32>
      tpu.vector_store %arg11[%c0_59, %c8_60, %c0_61], %18 {strides = array<i32>} : memref<10x25x128xf32, #tpu.memory_space<vmem>>, vector<1x16x128xf32>,
    } else {
    }
    %c0_i32_16 = arith.constant 0 : i32
    %22 = arith.cmpi sgt, %arg1, %c0_i32_16 : i32
    %23 = arith.extui %22 : i1 to i32
    %c0_i32_17 = arith.constant 0 : i32
    %24 = arith.cmpi ne, %23, %c0_i32_17 : i32
    scf.if %24 {
      %c0_59 = arith.constant 0 : index
      %c0_60 = arith.constant 0 : index
      %c0_61 = arith.constant 0 : index
      %c0_62 = arith.constant 0 : index
      %110 = vector.load %arg2[%c0_59, %c0_60, %c0_61, %c0_62] : memref<1x1x16x128xbf16, #tpu.memory_space<vmem>>, vector<1x1x16x128xbf16>
      %111 = vector.shape_cast %110 : vector<1x1x16x128xbf16> to vector<1x16x128xbf16>
      "tpu.trace_start"() <{level = 10 : i32, message = "hwc,cd->hwd"}> : () -> ()
      %cst_63 = arith.constant dense<0.000000e+00> : vector<1x16x128xf32>
      %112 = tpu.matmul %111, %0, %cst_63 {dimension_numbers = #tpu.dot_dimension_numbers<[2], [0], [0, 1], [1], [0, 0, 0, 1, 1, 1], [], []>} : vector<1x16x128xbf16>, vector<128x128xbf16>, vector<1x16x128xf32> -> vector<1x16x128xf32>
      "tpu.trace_stop"() : () -> ()
      %113 = vector.broadcast %2 : vector<1x1x128xf32> to vector<1x16x128xf32>
      %114 = arith.addf %112, %113 : vector<1x16x128xf32>
      %115 = arith.negf %114 : vector<1x16x128xf32>
      %116 = math.exp %115 : vector<1x16x128xf32>
      %cst_64 = arith.constant 1.000000e+00 : f32
      %117 = vector.broadcast %cst_64 : f32 to vector<1x16x128xf32>
      %118 = arith.addf %117, %116 : vector<1x16x128xf32>
      %119 = arith.divf %117, %118 : vector<1x16x128xf32>
      %120 = arith.mulf %114, %119 : vector<1x16x128xf32>
      %c0_65 = arith.constant 0 : index
      %c8_66 = arith.constant 8 : index
      %c0_67 = arith.constant 0 : index
      %121 = vector.load %arg11[%c0_65, %c8_66, %c0_67] : memref<10x25x128xf32, #tpu.memory_space<vmem>>, vector<1x16x128xf32>
      tpu.vector_store %arg11[%c0_65, %c8_66, %c0_67], %120 {strides = array<i32>} : memref<10x25x128xf32, #tpu.memory_space<vmem>>, vector<1x16x128xf32>,
    } else {
    }
    %c1_i32 = arith.constant 1 : i32
    %25 = arith.cmpi eq, %arg1, %c1_i32 : i32
    %26 = arith.extui %25 : i1 to i32
    %c0_i32_18 = arith.constant 0 : i32
    %27 = arith.cmpi ne, %26, %c0_i32_18 : i32
    scf.if %27 {
      %c9_59 = arith.constant 9 : index
      %c8_60 = arith.constant 8 : index
      %c0_61 = arith.constant 0 : index
      %110 = vector.load %arg11[%c9_59, %c8_60, %c0_61] : memref<10x25x128xf32, #tpu.memory_space<vmem>>, vector<1x16x128xf32>
      tpu.vector_store %arg11[%c9_59, %c8_60, %c0_61], %18 {strides = array<i32>} : memref<10x25x128xf32, #tpu.memory_space<vmem>>, vector<1x16x128xf32>,
    } else {
    }
    %c1_i32_19 = arith.constant 1 : i32
    %28 = arith.cmpi slt, %arg1, %c1_i32_19 : i32
    %29 = arith.extui %28 : i1 to i32
    %c0_i32_20 = arith.constant 0 : i32
    %30 = arith.cmpi ne, %29, %c0_i32_20 : i32
    scf.if %30 {
      %c0_59 = arith.constant 0 : index
      %c0_60 = arith.constant 0 : index
      %c0_61 = arith.constant 0 : index
      %c0_62 = arith.constant 0 : index
      %110 = vector.load %arg4[%c0_59, %c0_60, %c0_61, %c0_62] : memref<1x1x16x128xbf16, #tpu.memory_space<vmem>>, vector<1x1x16x128xbf16>
      %111 = vector.shape_cast %110 : vector<1x1x16x128xbf16> to vector<1x16x128xbf16>
      "tpu.trace_start"() <{level = 10 : i32, message = "hwc,cd->hwd"}> : () -> ()
      %cst_63 = arith.constant dense<0.000000e+00> : vector<1x16x128xf32>
      %112 = tpu.matmul %111, %0, %cst_63 {dimension_numbers = #tpu.dot_dimension_numbers<[2], [0], [0, 1], [1], [0, 0, 0, 1, 1, 1], [], []>} : vector<1x16x128xbf16>, vector<128x128xbf16>, vector<1x16x128xf32> -> vector<1x16x128xf32>
      "tpu.trace_stop"() : () -> ()
      %113 = vector.broadcast %2 : vector<1x1x128xf32> to vector<1x16x128xf32>
      %114 = arith.addf %112, %113 : vector<1x16x128xf32>
      %115 = arith.negf %114 : vector<1x16x128xf32>
      %116 = math.exp %115 : vector<1x16x128xf32>
      %cst_64 = arith.constant 1.000000e+00 : f32
      %117 = vector.broadcast %cst_64 : f32 to vector<1x16x128xf32>
      %118 = arith.addf %117, %116 : vector<1x16x128xf32>
      %119 = arith.divf %117, %118 : vector<1x16x128xf32>
      %120 = arith.mulf %114, %119 : vector<1x16x128xf32>
      %c9_65 = arith.constant 9 : index
      %c8_66 = arith.constant 8 : index
      %c0_67 = arith.constant 0 : index
      %121 = vector.load %arg11[%c9_65, %c8_66, %c0_67] : memref<10x25x128xf32, #tpu.memory_space<vmem>>, vector<1x16x128xf32>
      tpu.vector_store %arg11[%c9_65, %c8_66, %c0_67], %120 {strides = array<i32>} : memref<10x25x128xf32, #tpu.memory_space<vmem>>, vector<1x16x128xf32>,
    } else {
    }
    %c0_21 = arith.constant 0 : index
    %c0_22 = arith.constant 0 : index
    %31 = vector.load %arg7[%c0_21, %c0_22] : memref<9x128xf32, #tpu.memory_space<vmem>>, vector<9x128xf32>
    %c0_23 = arith.constant 0 : index
    %c0_24 = arith.constant 0 : index
    %32 = vector.load %arg8[%c0_23, %c0_24] : memref<1x128xf32, #tpu.memory_space<vmem>>, vector<1x128xf32>
    %33 = vector.shape_cast %32 : vector<1x128xf32> to vector<1x1x128xf32>
    %c0_25 = arith.constant 0 : index
    %c7_26 = arith.constant 7 : index
    %c0_27 = arith.constant 0 : index
    %34 = vector.load %arg11[%c0_25, %c7_26, %c0_27] : memref<10x25x128xf32, #tpu.memory_space<vmem>>, vector<8x16x128xf32>
    %35 = vector.extract_strided_slice %31 {offsets = [0, 0], sizes = [1, 128], strides = [1, 1]} : vector<9x128xf32> to vector<1x128xf32>
    %36 = vector.shape_cast %35 : vector<1x128xf32> to vector<128xf32>
    %37 = vector.shape_cast %36 : vector<128xf32> to vector<1x1x128xf32>
    %38 = vector.broadcast %37 : vector<1x1x128xf32> to vector<8x16x128xf32>
    %39 = arith.mulf %34, %38 : vector<8x16x128xf32>
    %c0_28 = arith.constant 0 : index
    %c8_29 = arith.constant 8 : index
    %c0_30 = arith.constant 0 : index
    %40 = vector.load %arg11[%c0_28, %c8_29, %c0_30] : memref<10x25x128xf32, #tpu.memory_space<vmem>>, vector<8x16x128xf32>
    %41 = vector.extract_strided_slice %31 {offsets = [1, 0], sizes = [1, 128], strides = [1, 1]} : vector<9x128xf32> to vector<1x128xf32>
    %42 = vector.shape_cast %41 : vector<1x128xf32> to vector<128xf32>
    %43 = vector.shape_cast %42 : vector<128xf32> to vector<1x1x128xf32>
    %44 = vector.broadcast %43 : vector<1x1x128xf32> to vector<8x16x128xf32>
    %45 = arith.mulf %40, %44 : vector<8x16x128xf32>
    %c0_31 = arith.constant 0 : index
    %c9 = arith.constant 9 : index
    %c0_32 = arith.constant 0 : index
    %46 = vector.load %arg11[%c0_31, %c9, %c0_32] : memref<10x25x128xf32, #tpu.memory_space<vmem>>, vector<8x16x128xf32>
    %47 = vector.extract_strided_slice %31 {offsets = [2, 0], sizes = [1, 128], strides = [1, 1]} : vector<9x128xf32> to vector<1x128xf32>
    %48 = vector.shape_cast %47 : vector<1x128xf32> to vector<128xf32>
    %49 = vector.shape_cast %48 : vector<128xf32> to vector<1x1x128xf32>
    %50 = vector.broadcast %49 : vector<1x1x128xf32> to vector<8x16x128xf32>
    %51 = arith.mulf %46, %50 : vector<8x16x128xf32>
    %52 = arith.addf %39, %51 : vector<8x16x128xf32>
    %c1_33 = arith.constant 1 : index
    %c7_34 = arith.constant 7 : index
    %c0_35 = arith.constant 0 : index
    %53 = vector.load %arg11[%c1_33, %c7_34, %c0_35] : memref<10x25x128xf32, #tpu.memory_space<vmem>>, vector<8x16x128xf32>
    %54 = vector.extract_strided_slice %31 {offsets = [3, 0], sizes = [1, 128], strides = [1, 1]} : vector<9x128xf32> to vector<1x128xf32>
    %55 = vector.shape_cast %54 : vector<1x128xf32> to vector<128xf32>
    %56 = vector.shape_cast %55 : vector<128xf32> to vector<1x1x128xf32>
    %57 = vector.broadcast %56 : vector<1x1x128xf32> to vector<8x16x128xf32>
    %58 = arith.mulf %53, %57 : vector<8x16x128xf32>
    %59 = arith.addf %45, %58 : vector<8x16x128xf32>
    %c1_36 = arith.constant 1 : index
    %c8_37 = arith.constant 8 : index
    %c0_38 = arith.constant 0 : index
    %60 = vector.load %arg11[%c1_36, %c8_37, %c0_38] : memref<10x25x128xf32, #tpu.memory_space<vmem>>, vector<8x16x128xf32>
    %61 = vector.extract_strided_slice %31 {offsets = [4, 0], sizes = [1, 128], strides = [1, 1]} : vector<9x128xf32> to vector<1x128xf32>
    %62 = vector.shape_cast %61 : vector<1x128xf32> to vector<128xf32>
    %63 = vector.shape_cast %62 : vector<128xf32> to vector<1x1x128xf32>
    %64 = vector.broadcast %63 : vector<1x1x128xf32> to vector<8x16x128xf32>
    %65 = arith.mulf %60, %64 : vector<8x16x128xf32>
    %66 = arith.addf %52, %65 : vector<8x16x128xf32>
    %c1_39 = arith.constant 1 : index
    %c9_40 = arith.constant 9 : index
    %c0_41 = arith.constant 0 : index
    %67 = vector.load %arg11[%c1_39, %c9_40, %c0_41] : memref<10x25x128xf32, #tpu.memory_space<vmem>>, vector<8x16x128xf32>
    %68 = vector.extract_strided_slice %31 {offsets = [5, 0], sizes = [1, 128], strides = [1, 1]} : vector<9x128xf32> to vector<1x128xf32>
    %69 = vector.shape_cast %68 : vector<1x128xf32> to vector<128xf32>
    %70 = vector.shape_cast %69 : vector<128xf32> to vector<1x1x128xf32>
    %71 = vector.broadcast %70 : vector<1x1x128xf32> to vector<8x16x128xf32>
    %72 = arith.mulf %67, %71 : vector<8x16x128xf32>
    %73 = arith.addf %59, %72 : vector<8x16x128xf32>
    %c2 = arith.constant 2 : index
    %c7_42 = arith.constant 7 : index
    %c0_43 = arith.constant 0 : index
    %74 = vector.load %arg11[%c2, %c7_42, %c0_43] : memref<10x25x128xf32, #tpu.memory_space<vmem>>, vector<8x16x128xf32>
    %75 = vector.extract_strided_slice %31 {offsets = [6, 0], sizes = [1, 128], strides = [1, 1]} : vector<9x128xf32> to vector<1x128xf32>
    %76 = vector.shape_cast %75 : vector<1x128xf32> to vector<128xf32>
    %77 = vector.shape_cast %76 : vector<128xf32> to vector<1x1x128xf32>
    %78 = vector.broadcast %77 : vector<1x1x128xf32> to vector<8x16x128xf32>
    %79 = arith.mulf %74, %78 : vector<8x16x128xf32>
    %80 = arith.addf %66, %79 : vector<8x16x128xf32>
    %c2_44 = arith.constant 2 : index
    %c8_45 = arith.constant 8 : index
    %c0_46 = arith.constant 0 : index
    %81 = vector.load %arg11[%c2_44, %c8_45, %c0_46] : memref<10x25x128xf32, #tpu.memory_space<vmem>>, vector<8x16x128xf32>
    %82 = vector.extract_strided_slice %31 {offsets = [7, 0], sizes = [1, 128], strides = [1, 1]} : vector<9x128xf32> to vector<1x128xf32>
    %83 = vector.shape_cast %82 : vector<1x128xf32> to vector<128xf32>
    %84 = vector.shape_cast %83 : vector<128xf32> to vector<1x1x128xf32>
    %85 = vector.broadcast %84 : vector<1x1x128xf32> to vector<8x16x128xf32>
    %86 = arith.mulf %81, %85 : vector<8x16x128xf32>
    %87 = arith.addf %73, %86 : vector<8x16x128xf32>
    %c2_47 = arith.constant 2 : index
    %c9_48 = arith.constant 9 : index
    %c0_49 = arith.constant 0 : index
    %88 = vector.load %arg11[%c2_47, %c9_48, %c0_49] : memref<10x25x128xf32, #tpu.memory_space<vmem>>, vector<8x16x128xf32>
    %89 = vector.extract_strided_slice %31 {offsets = [8, 0], sizes = [1, 128], strides = [1, 1]} : vector<9x128xf32> to vector<1x128xf32>
    %90 = vector.shape_cast %89 : vector<1x128xf32> to vector<128xf32>
    %91 = vector.shape_cast %90 : vector<128xf32> to vector<1x1x128xf32>
    %92 = vector.broadcast %91 : vector<1x1x128xf32> to vector<8x16x128xf32>
    %93 = arith.mulf %88, %92 : vector<8x16x128xf32>
    %94 = arith.addf %80, %93 : vector<8x16x128xf32>
    %95 = arith.addf %94, %87 : vector<8x16x128xf32>
    %96 = vector.broadcast %33 : vector<1x1x128xf32> to vector<8x16x128xf32>
    %97 = arith.addf %95, %96 : vector<8x16x128xf32>
    %98 = arith.negf %97 : vector<8x16x128xf32>
    %99 = math.exp %98 : vector<8x16x128xf32>
    %cst_50 = arith.constant 1.000000e+00 : f32
    %100 = vector.broadcast %cst_50 : f32 to vector<8x16x128xf32>
    %101 = arith.addf %100, %99 : vector<8x16x128xf32>
    %102 = arith.divf %100, %101 : vector<8x16x128xf32>
    %103 = arith.mulf %97, %102 : vector<8x16x128xf32>
    %104 = vector.shape_cast %103 : vector<8x16x128xf32> to vector<1x8x16x128xf32>
    %105 = arith.truncf %104 : vector<1x8x16x128xf32> to vector<1x8x16x128xbf16>
    %c0_51 = arith.constant 0 : index
    %c0_52 = arith.constant 0 : index
    %c0_53 = arith.constant 0 : index
    %c0_54 = arith.constant 0 : index
    %106 = vector.load %arg9[%c0_51, %c0_52, %c0_53, %c0_54] : memref<1x8x16x128xbf16, #tpu.memory_space<vmem>>, vector<1x8x16x128xbf16>
    tpu.vector_store %arg9[%c0_51, %c0_52, %c0_53, %c0_54], %105 {strides = array<i32>} : memref<1x8x16x128xbf16, #tpu.memory_space<vmem>>, vector<1x8x16x128xbf16>,
    %cst_55 = arith.constant dense<0.000000e+00> : vector<128xf32>
    %107 = vector.multi_reduction <add>, %103, %cst_55 [0, 1] : vector<8x16x128xf32> to vector<128xf32>
    %108 = vector.shape_cast %107 : vector<128xf32> to vector<1x1x128xf32>
    %c0_56 = arith.constant 0 : index
    %c0_57 = arith.constant 0 : index
    %c0_58 = arith.constant 0 : index
    %109 = vector.load %arg10[%c0_56, %c0_57, %c0_58] : memref<1x1x128xf32, #tpu.memory_space<vmem>>, vector<1x1x128xf32>
    tpu.vector_store %arg10[%c0_56, %c0_57, %c0_58], %108 {strides = array<i32>} : memref<1x1x128xf32, #tpu.memory_space<vmem>>, vector<1x1x128xf32>,
    return
  }
  func.func @transform_0(%arg0: i32, %arg1: i32) -> (i32, i32, i32, i32) {
    %c8_i32 = arith.constant 8 : i32
    %0 = arith.muli %arg1, %c8_i32 : i32
    %c1_i32 = arith.constant 1 : i32
    %1 = arith.subi %0, %c1_i32 : i32
    %c0_i32 = arith.constant 0 : i32
    %2 = arith.maxsi %1, %c0_i32 : i32
    %c0_i32_0 = arith.constant 0 : i32
    %c0_i32_1 = arith.constant 0 : i32
    %c0_i32_2 = arith.constant 0 : i32
    return %arg0, %2, %c0_i32_0, %c0_i32_1 : i32, i32, i32, i32
  }
  func.func @transform_1(%arg0: i32, %arg1: i32) -> (i32, i32, i32, i32) {
    %c0_i32 = arith.constant 0 : i32
    %c0_i32_0 = arith.constant 0 : i32
    %c0_i32_1 = arith.constant 0 : i32
    return %arg0, %arg1, %c0_i32, %c0_i32_0 : i32, i32, i32, i32
  }
  func.func @transform_2(%arg0: i32, %arg1: i32) -> (i32, i32, i32, i32) {
    %c1_i32 = arith.constant 1 : i32
    %0 = arith.addi %arg1, %c1_i32 : i32
    %c8_i32 = arith.constant 8 : i32
    %1 = arith.muli %0, %c8_i32 : i32
    %c15_i32 = arith.constant 15 : i32
    %2 = arith.minsi %1, %c15_i32 : i32
    %c0_i32 = arith.constant 0 : i32
    %c0_i32_0 = arith.constant 0 : i32
    %c0_i32_1 = arith.constant 0 : i32
    return %arg0, %2, %c0_i32, %c0_i32_0 : i32, i32, i32, i32
  }
  func.func @transform_3(%arg0: i32, %arg1: i32) -> (i32, i32) {
    %c0_i32 = arith.constant 0 : i32
    %c0_i32_0 = arith.constant 0 : i32
    %c0_i32_1 = arith.constant 0 : i32
    return %c0_i32, %c0_i32_0 : i32, i32
  }
  func.func @transform_4(%arg0: i32, %arg1: i32) -> (i32, i32) {
    %c0_i32 = arith.constant 0 : i32
    %c0_i32_0 = arith.constant 0 : i32
    %c0_i32_1 = arith.constant 0 : i32
    return %c0_i32, %c0_i32_0 : i32, i32
  }
  func.func @transform_5(%arg0: i32, %arg1: i32) -> (i32, i32) {
    %c0_i32 = arith.constant 0 : i32
    %c0_i32_0 = arith.constant 0 : i32
    %c0_i32_1 = arith.constant 0 : i32
    return %c0_i32, %c0_i32_0 : i32, i32
  }
  func.func @transform_6(%arg0: i32, %arg1: i32) -> (i32, i32) {
    %c0_i32 = arith.constant 0 : i32
    %c0_i32_0 = arith.constant 0 : i32
    %c0_i32_1 = arith.constant 0 : i32
    return %c0_i32, %c0_i32_0 : i32, i32
  }
  func.func @transform_7(%arg0: i32, %arg1: i32) -> (i32, i32, i32, i32) {
    %c0_i32 = arith.constant 0 : i32
    %c0_i32_0 = arith.constant 0 : i32
    %c0_i32_1 = arith.constant 0 : i32
    return %arg0, %arg1, %c0_i32, %c0_i32_0 : i32, i32, i32, i32
  }
  func.func @transform_8(%arg0: i32, %arg1: i32) -> (i32, i32, i32) {
    %c2_i32 = arith.constant 2 : i32
    %0 = arith.muli %arg0, %c2_i32 : i32
    %1 = arith.addi %0, %arg1 : i32
    %c0_i32 = arith.constant 0 : i32
    %c0_i32_0 = arith.constant 0 : i32
    %c0_i32_1 = arith.constant 0 : i32
    return %1, %c0_i32, %c0_i32_0 : i32, i32, i32
  }
}

module attributes {stable_mosaic.version = 11 : i64} {
  func.func @_se_kernel(%arg0: memref<2x2x128xf32, #tpu.memory_space<vmem>>, %arg1: memref<128x128xbf16, #tpu.memory_space<vmem>>, %arg2: memref<1x128xf32, #tpu.memory_space<vmem>>, %arg3: memref<128x128xbf16, #tpu.memory_space<vmem>>, %arg4: memref<1x128xf32, #tpu.memory_space<vmem>>, %arg5: memref<2x1x128xf32, #tpu.memory_space<vmem>>) attributes {dimension_semantics = [], scalar_prefetch = 0 : i64, scratch_operands = 0 : i64, tpu.core_type = #tpu.core_type<tc>} {
    %c0 = arith.constant 0 : index
    %c0_0 = arith.constant 0 : index
    %c0_1 = arith.constant 0 : index
    %0 = vector.load %arg0[%c0, %c0_0, %c0_1] : memref<2x2x128xf32, #tpu.memory_space<vmem>>, vector<2x2x128xf32>
    %cst = arith.constant dense<0.000000e+00> : vector<2x128xf32>
    %1 = vector.multi_reduction <add>, %0, %cst [1] : vector<2x2x128xf32> to vector<2x128xf32>
    %2 = vector.shape_cast %1 : vector<2x128xf32> to vector<2x1x128xf32>
    %3 = arith.truncf %2 : vector<2x1x128xf32> to vector<2x1x128xbf16>
    %c0_2 = arith.constant 0 : index
    %c0_3 = arith.constant 0 : index
    %4 = vector.load %arg1[%c0_2, %c0_3] : memref<128x128xbf16, #tpu.memory_space<vmem>>, vector<128x128xbf16>
    "tpu.trace_start"() <{level = 10 : i32, message = "bxc,cd->bxd"}> : () -> ()
    %cst_4 = arith.constant dense<0.000000e+00> : vector<2x1x128xf32>
    %5 = tpu.matmul %3, %4, %cst_4 {dimension_numbers = #tpu.dot_dimension_numbers<[2], [0], [0, 1], [1], [0, 0, 0, 1, 1, 1], [], []>} : vector<2x1x128xbf16>, vector<128x128xbf16>, vector<2x1x128xf32> -> vector<2x1x128xf32>
    "tpu.trace_stop"() : () -> ()
    %c0_5 = arith.constant 0 : index
    %c0_6 = arith.constant 0 : index
    %6 = vector.load %arg2[%c0_5, %c0_6] : memref<1x128xf32, #tpu.memory_space<vmem>>, vector<1x128xf32>
    %7 = vector.shape_cast %6 : vector<1x128xf32> to vector<1x1x128xf32>
    %8 = vector.broadcast %7 : vector<1x1x128xf32> to vector<2x1x128xf32>
    %9 = arith.addf %5, %8 : vector<2x1x128xf32>
    %10 = arith.negf %9 : vector<2x1x128xf32>
    %11 = math.exp %10 : vector<2x1x128xf32>
    %cst_7 = arith.constant 1.000000e+00 : f32
    %12 = vector.broadcast %cst_7 : f32 to vector<2x1x128xf32>
    %13 = arith.addf %12, %11 : vector<2x1x128xf32>
    %14 = arith.divf %12, %13 : vector<2x1x128xf32>
    %15 = arith.mulf %9, %14 : vector<2x1x128xf32>
    %16 = arith.truncf %15 : vector<2x1x128xf32> to vector<2x1x128xbf16>
    %c0_8 = arith.constant 0 : index
    %c0_9 = arith.constant 0 : index
    %17 = vector.load %arg3[%c0_8, %c0_9] : memref<128x128xbf16, #tpu.memory_space<vmem>>, vector<128x128xbf16>
    "tpu.trace_start"() <{level = 10 : i32, message = "bxc,cd->bxd"}> : () -> ()
    %cst_10 = arith.constant dense<0.000000e+00> : vector<2x1x128xf32>
    %18 = tpu.matmul %16, %17, %cst_10 {dimension_numbers = #tpu.dot_dimension_numbers<[2], [0], [0, 1], [1], [0, 0, 0, 1, 1, 1], [], []>} : vector<2x1x128xbf16>, vector<128x128xbf16>, vector<2x1x128xf32> -> vector<2x1x128xf32>
    "tpu.trace_stop"() : () -> ()
    %c0_11 = arith.constant 0 : index
    %c0_12 = arith.constant 0 : index
    %19 = vector.load %arg4[%c0_11, %c0_12] : memref<1x128xf32, #tpu.memory_space<vmem>>, vector<1x128xf32>
    %20 = vector.shape_cast %19 : vector<1x128xf32> to vector<1x1x128xf32>
    %21 = vector.broadcast %20 : vector<1x1x128xf32> to vector<2x1x128xf32>
    %22 = arith.addf %18, %21 : vector<2x1x128xf32>
    %23 = arith.negf %22 : vector<2x1x128xf32>
    %24 = math.exp %23 : vector<2x1x128xf32>
    %cst_13 = arith.constant 1.000000e+00 : f32
    %25 = vector.broadcast %cst_13 : f32 to vector<2x1x128xf32>
    %26 = arith.addf %25, %24 : vector<2x1x128xf32>
    %27 = arith.divf %25, %26 : vector<2x1x128xf32>
    %c0_14 = arith.constant 0 : index
    %c0_15 = arith.constant 0 : index
    %c0_16 = arith.constant 0 : index
    %28 = vector.load %arg5[%c0_14, %c0_15, %c0_16] : memref<2x1x128xf32, #tpu.memory_space<vmem>>, vector<2x1x128xf32>
    tpu.vector_store %arg5[%c0_14, %c0_15, %c0_16], %27 {strides = array<i32>} : memref<2x1x128xf32, #tpu.memory_space<vmem>>, vector<2x1x128xf32>,
    return
  }
}

module attributes {stable_mosaic.version = 11 : i64} {
  func.func @kernel(%arg0: i32, %arg1: i32, %arg2: memref<1x256x128xbf16, #tpu.memory_space<vmem>>, %arg3: memref<1x1x128xf32, #tpu.memory_space<vmem>>, %arg4: memref<128x128xbf16, #tpu.memory_space<vmem>>, %arg5: memref<1x128xf32, #tpu.memory_space<vmem>>, %arg6: memref<1x256x128xbf16, #tpu.memory_space<vmem>>, %arg7: memref<1x256x128xf32, #tpu.memory_space<vmem>>) attributes {dimension_semantics = [#tpu.dimension_semantics<parallel>, #tpu.dimension_semantics<parallel>], iteration_bounds = array<i64: 2, 1>, scalar_prefetch = 0 : i64, scratch_operands = 0 : i64, tpu.core_type = #tpu.core_type<tc>, window_params = [{transform_indices = @transform_0, window_bounds = array<i64: 1, 256, 128>}, {transform_indices = @transform_1, window_bounds = array<i64: 1, 1, 128>}, {pipeline_mode = #tpu.pipeline_mode<synchronous>, transform_indices = @transform_2, window_bounds = array<i64: 128, 128>}, {pipeline_mode = #tpu.pipeline_mode<synchronous>, transform_indices = @transform_3, window_bounds = array<i64: 1, 128>}, {transform_indices = @transform_4, window_bounds = array<i64: 1, 256, 128>}, {transform_indices = @transform_5, window_bounds = array<i64: 1, 256, 128>}]} {
    %c0 = arith.constant 0 : index
    %c0_0 = arith.constant 0 : index
    %c0_1 = arith.constant 0 : index
    %0 = vector.load %arg3[%c0, %c0_0, %c0_1] : memref<1x1x128xf32, #tpu.memory_space<vmem>>, vector<1x1x128xf32>
    %1 = vector.shape_cast %0 : vector<1x1x128xf32> to vector<1x128xf32>
    %2 = arith.truncf %1 : vector<1x128xf32> to vector<1x128xbf16>
    %c0_2 = arith.constant 0 : index
    %c0_3 = arith.constant 0 : index
    %c0_4 = arith.constant 0 : index
    %3 = vector.load %arg2[%c0_2, %c0_3, %c0_4] : memref<1x256x128xbf16, #tpu.memory_space<vmem>>, vector<1x256x128xbf16>
    %4 = vector.shape_cast %3 : vector<1x256x128xbf16> to vector<256x128xbf16>
    %5 = vector.broadcast %2 : vector<1x128xbf16> to vector<256x128xbf16>
    %6 = arith.mulf %4, %5 : vector<256x128xbf16>
    %c0_5 = arith.constant 0 : index
    %c0_6 = arith.constant 0 : index
    %7 = vector.load %arg4[%c0_5, %c0_6] : memref<128x128xbf16, #tpu.memory_space<vmem>>, vector<128x128xbf16>
    %cst = arith.constant dense<0.000000e+00> : vector<256x128xf32>
    %8 = tpu.matmul %6, %7, %cst {dimension_numbers = #tpu.dot_dimension_numbers<[1], [0], [0], [1], [0, 0, 1, 1], [], []>} : vector<256x128xbf16>, vector<128x128xbf16>, vector<256x128xf32> -> vector<256x128xf32>
    %c0_7 = arith.constant 0 : index
    %c0_8 = arith.constant 0 : index
    %9 = vector.load %arg5[%c0_7, %c0_8] : memref<1x128xf32, #tpu.memory_space<vmem>>, vector<1x128xf32>
    %10 = vector.broadcast %9 : vector<1x128xf32> to vector<256x128xf32>
    %11 = arith.addf %8, %10 : vector<256x128xf32>
    %c0_9 = arith.constant 0 : index
    %c0_10 = arith.constant 0 : index
    %c0_11 = arith.constant 0 : index
    %12 = vector.load %arg6[%c0_9, %c0_10, %c0_11] : memref<1x256x128xbf16, #tpu.memory_space<vmem>>, vector<1x256x128xbf16>
    %13 = vector.shape_cast %12 : vector<1x256x128xbf16> to vector<256x128xbf16>
    %14 = arith.extf %13 : vector<256x128xbf16> to vector<256x128xf32>
    %15 = arith.addf %11, %14 : vector<256x128xf32>
    %16 = vector.shape_cast %15 : vector<256x128xf32> to vector<1x256x128xf32>
    %c0_12 = arith.constant 0 : index
    %c0_13 = arith.constant 0 : index
    %c0_14 = arith.constant 0 : index
    %17 = vector.load %arg7[%c0_12, %c0_13, %c0_14] : memref<1x256x128xf32, #tpu.memory_space<vmem>>, vector<1x256x128xf32>
    tpu.vector_store %arg7[%c0_12, %c0_13, %c0_14], %16 {strides = array<i32>} : memref<1x256x128xf32, #tpu.memory_space<vmem>>, vector<1x256x128xf32>,
    return
  }
  func.func @transform_0(%arg0: i32, %arg1: i32) -> (i32, i32, i32) {
    %c0_i32 = arith.constant 0 : i32
    %c0_i32_0 = arith.constant 0 : i32
    return %arg0, %arg1, %c0_i32 : i32, i32, i32
  }
  func.func @transform_1(%arg0: i32, %arg1: i32) -> (i32, i32, i32) {
    %c0_i32 = arith.constant 0 : i32
    %c0_i32_0 = arith.constant 0 : i32
    %c0_i32_1 = arith.constant 0 : i32
    return %arg0, %c0_i32, %c0_i32_0 : i32, i32, i32
  }
  func.func @transform_2(%arg0: i32, %arg1: i32) -> (i32, i32) {
    %c0_i32 = arith.constant 0 : i32
    %c0_i32_0 = arith.constant 0 : i32
    %c0_i32_1 = arith.constant 0 : i32
    return %c0_i32, %c0_i32_0 : i32, i32
  }
  func.func @transform_3(%arg0: i32, %arg1: i32) -> (i32, i32) {
    %c0_i32 = arith.constant 0 : i32
    %c0_i32_0 = arith.constant 0 : i32
    %c0_i32_1 = arith.constant 0 : i32
    return %c0_i32, %c0_i32_0 : i32, i32
  }
  func.func @transform_4(%arg0: i32, %arg1: i32) -> (i32, i32, i32) {
    %c0_i32 = arith.constant 0 : i32
    %c0_i32_0 = arith.constant 0 : i32
    return %arg0, %arg1, %c0_i32 : i32, i32, i32
  }
  func.func @transform_5(%arg0: i32, %arg1: i32) -> (i32, i32, i32) {
    %c0_i32 = arith.constant 0 : i32
    %c0_i32_0 = arith.constant 0 : i32
    return %arg0, %arg1, %c0_i32 : i32, i32, i32
  }
}

</mosaic_0001>

<bundles_post_ra>
// kernel: mbconv_forward.4
= control target key start
LH: loop header
LB: loop body
LE: loop exit
PB: predicated region body
PF: predicated region fallthrough
CT: control target
= control target key end

     0   :  { %v499_v0 = vmov 0.0   ;;  %vm500_vm0 = vmmov 0   ;;  %vm23_vm1 = vcmask 1041408   ;;  %vm61_vm2 = vcmask 1041409   ;;  %s618_s1 = inlined_call_operand.vmem [shape: bf16[128,128], index: 1, kind: input, shape index: {}]   ;;  %s619_s0 = inlined_call_operand.vmem [shape: f32[2,2,128], index: 0, kind: input, shape index: {}]   ;;  %s620_s2 = inlined_call_operand.vmem [shape: f32[1,128], index: 2, kind: input, shape index: {}]   ;;  %s621_s3 = inlined_call_operand.vmem [shape: bf16[128,128], index: 3, kind: input, shape index: {}]   ;;  %s622_s4 = inlined_call_operand.vmem [shape: f32[1,128], index: 4, kind: input, shape index: {}]   ;;  %s623_s5 = inlined_call_operand.vmem [shape: f32[2,1,128], index: 5, kind: output, shape index: {}]  }
   0x1   :  { %422 = vmatprep.subr.bf16.mxu0 %v499_v0  ;;  %v465_v1 = vld [vmem:[%s618_s1 + $0x38] sm:$0xff]   ;;  %438 = vmatprep.mubr.msk.bf16.mxu0 %vm500_vm0, %v499_v0  ;;  %v466_v2 = vld [vmem:[%s618_s1 + $0x30] sm:$0xff]   ;;  %v467_v3 = vld [vmem:[%s618_s1 + $0x28] sm:$0xff]   ;;  %v501_v39 = vmov 1966171168   ;;  %v118_v41 = vlaneseq }
   0x2   :  { %442 = vmatprep.subr.bf16.mxu1 %v499_v0  ;;  %458 = vmatprep.mubr.msk.bf16.mxu1 %vm500_vm0, %v499_v0  ;;  %v21_v4 = vld [vmem:[%s619_s0] sm:$0x3]  ;;  %v22_v5 = vld [vmem:[%s619_s0 + $0x2] sm:$0x3]  ;;  %v469_v13 = vld [vmem:[%s618_s1 + $0x18] sm:$0xff]   ;;  %v116_v40 = vunpack.c.l.s4 %v501_v39 }
   0x3   :  { %423 = vmatpush3.bf16.msra.mxu0 %v465_v1  ;;  %v24_v6 = vsel %vm23_vm1, %v21_v4, 0.0  ;;  %v31_v7 = vsel %vm23_vm1, %v22_v5, 0.0  ;;  %v468_v8 = vld [vmem:[%s618_s1 + $0x20] sm:$0xff]   ;;  %v470_v18 = vld [vmem:[%s618_s1 + $0x10] sm:$0xff]   ;;  %v471_v23 = vld [vmem:[%s618_s1 + $0x8] sm:$0xff]   ;;  %v119_v43 = vshrl.u32 %v118_v41, 7 }
   0x4   :  { %424 = vmatprep.subr.bf16.mxu0 %v499_v0  ;;  %v25_v9 = vrot.slane %v24_v6, 4  ;;  %v32_v10 = vrot.slane %v31_v7, 4  ;;  %v472_v28 = vld [vmem:[%s618_s1] sm:$0xff]   ;;  %v474_v31 = vld [vmem:[%s621_s3 + $0x38] sm:$0xff]   ;;  %v475_v32 = vld [vmem:[%s621_s3 + $0x30] sm:$0xff]   ;;  %v117_v42 = vunpack.c.0.s8 %v116_v40 }
   0x5   :  { %443 = vmatpush3.bf16.msra.mxu1 %v474_v31  ;;  %v476_v33 = vld [vmem:[%s621_s3 + $0x28] sm:$0xff]   ;;  %v477_v34 = vld [vmem:[%s621_s3 + $0x20] sm:$0xff]   ;;  %v478_v35 = vld [vmem:[%s621_s3 + $0x18] sm:$0xff]  }
   0x6   :  { %v26_v11 = vadd.f32 %v25_v9, %v24_v6  ;;  %v33_v12 = vadd.f32 %v32_v10, %v31_v7  ;;  %444 = vmatprep.subr.bf16.mxu1 %v499_v0  ;;  %v479_v36 = vld [vmem:[%s621_s3 + $0x10] sm:$0xff]   ;;  %v480_v37 = vld [vmem:[%s621_s3 + $0x8] sm:$0xff]   ;;  %v481_v38 = vld [vmem:[%s621_s3] sm:$0xff]   ;;  %v120_v45 = vsub.s32 %v117_v42, %v119_v43 }
   0x7   :  { %425 = vmatpush3.bf16.msra.mxu0 %v466_v2  ;;  %v473_v44 = vld [vmem:[%s620_s2] ss:$0 sps:$4 sm:$0x11]  }
   0x8   :  { %426 = vmatprep.subr.bf16.mxu0 %v499_v0  ;;  %v27_v14 = vrot.slane %v26_v11, 2  ;;  %v34_v15 = vrot.slane %v33_v12, 2  ;;  %v121_v46 = vrot.slane %v473_v44, %v120_v45  ;;  %v482_v10 = vld [vmem:[%s622_s4] ss:$0 sps:$4 sm:$0x11]  }
   0x9   :  { %445 = vmatpush3.bf16.msra.mxu1 %v475_v32 }
   0xa   :  { %v28_v16 = vadd.f32 %v27_v14, %v26_v11  ;;  %v35_v17 = vadd.f32 %v34_v15, %v33_v12  ;;  %446 = vmatprep.subr.bf16.mxu1 %v499_v0  ;;  %v128_v47 = vrot.slane %v121_v46, %v120_v45  ;;  %v292_v11 = vrot.slane %v482_v10, %v120_v45 }
   0xb   :  { %427 = vmatpush3.bf16.msra.mxu0 %v467_v3 }
   0xc   :  { %428 = vmatprep.subr.bf16.mxu0 %v499_v0  ;;  %v29_v19 = vrot.slane %v28_v16, 1  ;;  %v36_v20 = vrot.slane %v35_v17, 1  ;;  %v299_v12 = vrot.slane %v292_v11, %v120_v45 }
   0xd   :  { %447 = vmatpush3.bf16.msra.mxu1 %v476_v33 }
   0xe   :  { %v30_v21 = vadd.f32 %v29_v19, %v28_v16  ;;  %v37_v22 = vadd.f32 %v36_v20, %v35_v17  ;;  %448 = vmatprep.subr.bf16.mxu1 %v499_v0 }
   0xf   :  { %429 = vmatpush3.bf16.msra.mxu0 %v468_v8 }
  0x10   :  { %430 = vmatprep.subr.bf16.mxu0 %v499_v0  ;;  %v38_v24 = vpack.c.bf16 %v30_v21, %v30_v21  ;;  %v39_v25 = vpack.c.bf16 %v37_v22, %v37_v22 }
  0x11   :  { %449 = vmatpush3.bf16.msra.mxu1 %v477_v34 }
  0x12   :  { %v59_v26 = vunpack.c.l.b16 %v38_v24  ;;  %v60_v27 = vunpack.c.l.b16 %v39_v25  ;;  %450 = vmatprep.subr.bf16.mxu1 %v499_v0 }
  0x13   :  { %431 = vmatpush3.bf16.msra.mxu0 %v469_v13 }
  0x14   :  { %432 = vmatprep.subr.bf16.mxu0 %v499_v0  ;;  %v62_v29 = vsel %vm61_vm2, %v60_v27, %v59_v26 }
  0x15   :  { %v63_v30 = vpack.c.b16 %v62_v29, %v62_v29  ;;  %451 = vmatpush3.bf16.msra.mxu1 %v478_v35 }
  0x16   :  { %452 = vmatprep.subr.bf16.mxu1 %v499_v0 }
  0x17   :  { %433 = vmatpush3.bf16.msra.mxu0 %v470_v18 }
  0x18   :  { %434 = vmatprep.subr.bf16.mxu0 %v499_v0 }
  0x19   :  { %453 = vmatpush3.bf16.msra.mxu1 %v479_v36 }
  0x1a   :  { %454 = vmatprep.subr.bf16.mxu1 %v499_v0 }
  0x1b   :  { %435 = vmatpush3.bf16.msra.mxu0 %v471_v23 }
  0x1c   :  { %436 = vmatprep.subr.bf16.mxu0 %v499_v0 }
  0x1d   :  { %455 = vmatpush3.bf16.msra.mxu1 %v480_v37 }
  0x1e   :  { %456 = vmatprep.subr.bf16.mxu1 %v499_v0 }
  0x1f   :  { %437 = vmatpush3.bf16.msra.mxu0 %v472_v28 }
  0x21   :  { %457 = vmatpush3.bf16.msra.mxu1 %v481_v38 }
  0x22   :  { %439 = vmatmul.mubr.bf16.vlgmr.msra.gmra.mxu0 %v63_v30 }
  0xe2   :  { %v164_v48 = vpop.f32.mrf.mxu0 }
  0xe3   :  { %v165_v49 = vadd.f32 %v164_v48, %v128_v47 }
  0xe4   :  { %v440_v50 = vpop.f32.mrf.mxu0 }
  0xe5   :  { %v177_v51 = vrot.slane %v165_v49, %v120_v45 }
  0xe6   :  { %v167_v52 = vpop.f32.mrf.mxu0 }
  0xe7   :  { %v178_v53 = vcombine.high %v177_v51, %v177_v51  ;;  %v185_v54 = vrot.slane %v177_v51, %v120_v45 }
  0xe8   :  { %v441_v55 = vpop.f32.mrf.mxu0 }
  0xe9   :  { %v192_v56 = vrot.slane %v178_v53, %v120_v45  ;;  %v392_v57 = vmul.f32 -1.442695, %v185_v54 }
  0xeb   :  { %483 = vpow2.f32 %v392_v57  ;;  %v393_v58 = vmul.f32 -1.442695, %v192_v56 }
  0xed   :  { %485 = vpow2.f32 %v393_v58 }
  0xf8   :  { %v484_v59 = vpop.eup %483 }
  0xf9   :  { %v201_v60 = vadd.f32 1.0, %v484_v59 }
  0xfa   :  { %v486_v61 = vpop.eup %485 }
  0xfb   :  { %v202_v62 = vadd.f32 1.0, %v486_v61  ;;  %487 = vrcp.f32 %v201_v60 }
  0xfd   :  { %489 = vrcp.f32 %v202_v62 }
 0x108   :  { %v488_v63 = vpop.eup %487 }
 0x109   :  { %v207_v0 = vmul.f32 %v488_v63, %v185_v54 }
 0x10a   :  { %v490_v1 = vpop.eup %489 }
 0x10b   :  { %v208_v2 = vmul.f32 %v490_v1, %v192_v56  ;;  %v209_v3 = vpack.c.bf16 %v207_v0, %v207_v0 }
 0x10d   :  { %v210_v4 = vpack.c.bf16 %v208_v2, %v208_v2  ;;  %v230_v6 = vunpack.c.l.b16 %v209_v3 }
 0x10f   :  { %v231_v5 = vunpack.c.l.b16 %v210_v4 }
 0x111   :  { %v232_v7 = vrot.slane %v231_v5, 7 }
 0x113   :  { %v233_v8 = vsel %vm61_vm2, %v232_v7, %v230_v6 }
 0x114   :  { %v234_v9 = vpack.c.b16 %v233_v8, %v233_v8 }
 0x116   :  { %459 = vmatmul.mubr.bf16.vlgmr.msra.gmra.mxu1 %v234_v9 }
 0x1d6   :  { %v335_v13 = vpop.f32.mrf.mxu1 }
 0x1d7   :  { %v336_v14 = vadd.f32 %v335_v13, %v299_v12 }
 0x1d8   :  { %v460_v15 = vpop.f32.mrf.mxu1 }
 0x1d9   :  { %v348_v16 = vrot.slane %v336_v14, %v120_v45 }
 0x1da   :  { %v338_v17 = vpop.f32.mrf.mxu1 }
 0x1db   :  { %v349_v18 = vcombine.high %v348_v16, %v348_v16  ;;  %v356_v19 = vrot.slane %v348_v16, %v120_v45 }
 0x1dc   :  { %v461_v20 = vpop.f32.mrf.mxu1 }
 0x1dd   :  { %v363_v21 = vrot.slane %v349_v18, %v120_v45  ;;  %v402_v22 = vmul.f32 -1.442695, %v356_v19 }
 0x1df   :  { %491 = vpow2.f32 %v402_v22  ;;  %v403_v23 = vmul.f32 -1.442695, %v363_v21 }
 0x1e1   :  { %493 = vpow2.f32 %v403_v23 }
 0x1ec   :  { %v492_v24 = vpop.eup %491 }
 0x1ed   :  { %v372_v25 = vadd.f32 1.0, %v492_v24 }
 0x1ee   :  { %v494_v26 = vpop.eup %493 }
 0x1ef   :  { %v373_v27 = vadd.f32 1.0, %v494_v26  ;;  %495 = vrcp.f32 %v372_v25 }
 0x1f1   :  { %497 = vrcp.f32 %v373_v27 }
 0x1fc   :  { %v496_v28 = vpop.eup %495 }
 0x1fd   :  { %378 = vst [vmem:[%s623_s5] sm:$0x1] %v496_v28 }
 0x1fe   :  { %v498_v29 = vpop.eup %497 }
 0x1ff   :  { %379 = vst [vmem:[%s623_s5 + $0x1] sm:$0x1] %v498_v29 }

// kernel: mbconv_forward.5
= control target key start
LH: loop header
LB: loop body
LE: loop exit
PB: predicated region body
PF: predicated region fallthrough
CT: control target
= control target key end

     0   :  { %s1257_s18 = smov 0   ;;  %s1259_s19 = smov 0   ;;  %s1518_s0 = inlined_call_operand.vmem [shape: bf16[2,256,128], index: 0, kind: input, shape index: {}]   ;;  %s1519_s1 = inlined_call_operand.vmem [shape: f32[2,1,128], index: 1, kind: input, shape index: {}]   ;;  %s1520_s2 = inlined_call_operand.vmem [shape: bf16[128,128], index: 2, kind: input, shape index: {}]   ;;  %s1521_s3 = inlined_call_operand.vmem [shape: f32[1,128], index: 3, kind: input, shape index: {}]   ;;  %s1522_s4 = inlined_call_operand.vmem [shape: bf16[2,256,128], index: 4, kind: input, shape index: {}]   ;;  %s1523_s5 = inlined_call_operand.vmem [shape: f32[2,256,128], index: 5, kind: output, shape index: {}]  }
   0x1   :  { %s1261_s20 = smov 0  }
   0x2 LB: > { %s27_s21 = sadd.s32 1, %s1221_s19  ;;  %p966_p0 = scmp.ge.s32.totalorder %s1225_s20, 1  ;;  %s1225_s20 = sphi %s1261_s20, %s15_s20   ;;  %s1221_s19 = sphi %s1259_s19, %s1525_s19   ;;  %s1217_s18 = sphi %s1257_s18, %s1524_s18  }
   0x3   : > { %p29_p1 = scmp.ge.s32.totalorder %s27_s21, 2  ;;  %p233_p2 = scmp.lt.s32.totalorder %s1225_s20, 3 }
   0x5   : > { %s1527_s21 = smov (%p29_p1, %s27_s21), 0  ;;  %p234_p3 = pnand %p966_p0, %p233_p2 }
   0x6   : > { %p282_p4 = scmp.lt.s32.totalorder (!%p234_p3), %s1217_s18, 1 }
   0x7   : > { %237 = sbr.rel (%p234_p3) target bundleno = 273 (0x111), region = 40 }
   0xc   : > { %v1195_v0 = vld [vmem:[%s1520_s2 + $0x38] sm:$0xff]   ;;  %v1196_v1 = vld [vmem:[%s1520_s2 + $0x30] sm:$0xff]   ;;  %v352_v2 = vlaneseq  ;;  %s1529_s18 = smov (!%p282_p4, %s1217_s18), 1  ;;  %v1197_v3 = vld [vmem:[%s1520_s2 + $0x28] sm:$0xff]  }
   0xd   : > { %1107 = vmatprep.subr.bf16.mxu0 %v1195_v0  ;;  %1155 = vmatprep.subr.bf16.mxu1 %v1195_v0  ;;  %s293_s30 = scalar_lea.vmem %s1519_s1, %s1529_s18  ;;  %s1001_s6 = sshll.u32 %s1529_s18, 7  ;;  %v1198_v5 = vld [vmem:[%s1520_s2 + $0x20] sm:$0xff]   ;;  %v1199_v10 = vld [vmem:[%s1520_s2 + $0x18] sm:$0xff]   ;;  %v1200_v17 = vld [vmem:[%s1520_s2 + $0x10] sm:$0xff]  }
   0xe   : > { %1108 = vmatpush3.bf16.msra.mxu0 %v1195_v0  ;;  %1163 = vmatpush3.bf16.msra.mxu1 %v1195_v0  ;;  %v353_v4 = vshrl.u32 %v352_v2, 7  ;;  %v315_v6 = vld [vmem:[%s293_s30] sm:$0x1]  ;;  %s1299_s11 = scalar_lea.vmem %s1518_s0, %s1001_s6  ;;  %v1201_v24 = vld [vmem:[%s1520_s2 + $0x8] sm:$0xff]   ;;  %s1384_s26 = scalar_lea.vmem %s1522_s4, %s1001_s6 }
   0xf   : > { %1109 = vmatprep.subr.bf16.mxu0 %v1196_v1  ;;  %1156 = vmatprep.subr.bf16.mxu1 %v1196_v1  ;;  %v316_v7 = vpack.c.bf16 %v315_v6, %v315_v6  ;;  %v317_v11 = vld [vmem:[%s1299_s11] sm:$0xf]  ;;  %v318_v13 = vld [vmem:[%s1299_s11 + $0x4] sm:$0xf]  ;;  %v319_v26 = vld [vmem:[%s1299_s11 + $0x8] sm:$0xf] }
  0x10   : > { %v354_v8 = vsub.s32 0, %v353_v4  ;;  %v333_v14 = vld [vmem:[%s1299_s11 + $0x40] sm:$0xf]  ;;  %v334_v15 = vld [vmem:[%s1299_s11 + $0x44] sm:$0xf]  ;;  %s1003_s29 = sshll.u32 %s1529_s18, 8 }
  0x11   : > { %v350_v9 = vpack.i.b16 %v316_v7, %v316_v7  ;;  %v1202_v25 = vld [vmem:[%s1520_s2] sm:$0xff]   ;;  %v320_v27 = vld [vmem:[%s1299_s11 + $0xc] sm:$0xf]  ;;  %v335_v28 = vld [vmem:[%s1299_s11 + $0x48] sm:$0xf]  ;;  %s1401_s7 = scalar_lea.vmem %s1523_s5, %s1003_s29 }
  0x12   : > { %1110 = vmatpush3.bf16.msra.mxu0 %v1196_v1  ;;  %1164 = vmatpush3.bf16.msra.mxu1 %v1196_v1  ;;  %v336_v29 = vld [vmem:[%s1299_s11 + $0x4c] sm:$0xf]  ;;  %v321_v30 = vld [vmem:[%s1299_s11 + $0x10] sm:$0xf]  ;;  %v322_v31 = vld [vmem:[%s1299_s11 + $0x14] sm:$0xf] }
  0x13   : > { %1111 = vmatprep.subr.bf16.mxu0 %v1197_v3  ;;  %1157 = vmatprep.subr.bf16.mxu1 %v1197_v3  ;;  %v355_v12 = vrot.slane %v350_v9, %v354_v8  ;;  %v337_v32 = vld [vmem:[%s1299_s11 + $0x50] sm:$0xf]  ;;  %v338_v33 = vld [vmem:[%s1299_s11 + $0x54] sm:$0xf]  ;;  %v323_v44 = vld [vmem:[%s1299_s11 + $0x18] sm:$0xf] }
  0x14   : > { %v324_v45 = vld [vmem:[%s1299_s11 + $0x1c] sm:$0xf]  ;;  %v339_v48 = vld [vmem:[%s1299_s11 + $0x58] sm:$0xf]  ;;  %v325_v50 = vld [vmem:[%s1299_s11 + $0x20] sm:$0xf] }
  0x15   : > { %v1308_v16 = vcombine.low %v355_v12, %v355_v12  ;;  %v340_v49 = vld [vmem:[%s1299_s11 + $0x5c] sm:$0xf]  ;;  %v326_v51 = vld [vmem:[%s1299_s11 + $0x24] sm:$0xf]  ;;  %v341_v52 = vld [vmem:[%s1299_s11 + $0x60] sm:$0xf] }
  0x16   : > { %1112 = vmatpush3.bf16.msra.mxu0 %v1197_v3  ;;  %1165 = vmatpush3.bf16.msra.mxu1 %v1197_v3  ;;  %v342_v53 = vld [vmem:[%s1299_s11 + $0x64] sm:$0xf]  ;;  %v327_v0 = vld [vmem:[%s1299_s11 + $0x28] sm:$0xf]  ;;  %v328_v1 = vld [vmem:[%s1299_s11 + $0x2c] sm:$0xf] }
  0x17   : > { %1113 = vmatprep.subr.bf16.mxu0 %v1198_v5  ;;  %1158 = vmatprep.subr.bf16.mxu1 %v1198_v5  ;;  %v360_v18 = vmul.bf16 %v1308_v16, %v317_v11  ;;  %v361_v19 = vmul.bf16 %v1308_v16, %v318_v13  ;;  %v376_v20 = vmul.bf16 %v1308_v16, %v333_v14  ;;  %v343_v4 = vld [vmem:[%s1299_s11 + $0x68] sm:$0xf]  ;;  %v329_v6 = vld [vmem:[%s1299_s11 + $0x30] sm:$0xf]  ;;  %v330_v7 = vld [vmem:[%s1299_s11 + $0x34] sm:$0xf] }
  0x18   : > { %v377_v21 = vmul.bf16 %v1308_v16, %v334_v15  ;;  %v362_v34 = vmul.bf16 %v1308_v16, %v319_v26  ;;  %v363_v35 = vmul.bf16 %v1308_v16, %v320_v27  ;;  %v378_v36 = vmul.bf16 %v1308_v16, %v335_v28  ;;  %v345_v8 = vld [vmem:[%s1299_s11 + $0x70] sm:$0xf]  ;;  %v346_v9 = vld [vmem:[%s1299_s11 + $0x74] sm:$0xf]  ;;  %v348_v26 = vld [vmem:[%s1299_s11 + $0x7c] sm:$0xf] }
  0x19   : > { %v975_v22 = vcombine.low %v360_v18, %v361_v19  ;;  %v379_v37 = vmul.bf16 %v1308_v16, %v336_v29  ;;  %v364_v38 = vmul.bf16 %v1308_v16, %v321_v30  ;;  %v365_v39 = vmul.bf16 %v1308_v16, %v322_v31 }
  0x1a   : > { %1114 = vmatpush3.bf16.msra.mxu0 %v1198_v5  ;;  %1166 = vmatpush3.bf16.msra.mxu1 %v1198_v5  ;;  %v983_v23 = vcombine.low %v376_v20, %v377_v21  ;;  %v380_v40 = vmul.bf16 %v1308_v16, %v337_v32  ;;  %v381_v41 = vmul.bf16 %v1308_v16, %v338_v33  ;;  %v344_v5 = vld [vmem:[%s1299_s11 + $0x6c] sm:$0xf]  ;;  %v331_v21 = vld [vmem:[%s1299_s11 + $0x38] sm:$0xf] }
  0x1b   : > { %1115 = vmatprep.subr.bf16.mxu0 %v1199_v10  ;;  %1159 = vmatprep.subr.bf16.mxu1 %v1199_v10  ;;  %v976_v42 = vcombine.low %v362_v34, %v363_v35  ;;  %v984_v43 = vcombine.low %v378_v36, %v379_v37  ;;  %v977_v46 = vcombine.low %v364_v38, %v365_v39  ;;  %v1068_v33 = vld [vmem:[%s1384_s26 + $0x8] sm:$0xff]   ;;  %v1005_v35 = vld [vmem:[%s1384_s26] sm:$0xff]  }
  0x1c   : > { %1123 = vmatprep.mubr.bf16.mxu0 %v975_v22  ;;  %1139 = vmatprep.mubr.bf16.mxu1 %v983_v23  ;;  %v985_v47 = vcombine.low %v380_v40, %v381_v41  ;;  %v366_v54 = vmul.bf16 %v1308_v16, %v323_v44  ;;  %v367_v55 = vmul.bf16 %v1308_v16, %v324_v45  ;;  %v1076_v34 = vld [vmem:[%s1384_s26 + $0x48] sm:$0xff]   ;;  %v1075_v36 = vld [vmem:[%s1384_s26 + $0x40] sm:$0xff]   ;;  %v1010_v37 = vunpack.c.l.bf16 %v1068_v33 }
  0x1d   : > { %v382_v56 = vmul.bf16 %v1308_v16, %v339_v48  ;;  %v383_v57 = vmul.bf16 %v1308_v16, %v340_v49  ;;  %v368_v58 = vmul.bf16 %v1308_v16, %v325_v50  ;;  %v369_v59 = vmul.bf16 %v1308_v16, %v326_v51 }
  0x1e   : > { %1116 = vmatpush3.bf16.msra.mxu0 %v1199_v10  ;;  %1167 = vmatpush3.bf16.msra.mxu1 %v1199_v10  ;;  %v384_v60 = vmul.bf16 %v1308_v16, %v341_v52  ;;  %v385_v61 = vmul.bf16 %v1308_v16, %v342_v53  ;;  %v978_v62 = vcombine.low %v366_v54, %v367_v55  ;;  %v1042_v38 = vunpack.c.l.bf16 %v1076_v34  ;;  %v1406_v53 = vld [vmem:[%s1384_s26 + $0x18] sm:$0xff]  }
  0x1f   : > { %1117 = vmatprep.subr.bf16.mxu0 %v1200_v17  ;;  %1160 = vmatprep.subr.bf16.mxu1 %v1200_v17  ;;  %v986_v63 = vcombine.low %v382_v56, %v383_v57  ;;  %v979_v2 = vcombine.low %v368_v58, %v369_v59  ;;  %v370_v10 = vmul.bf16 %v1308_v16, %v327_v0  ;;  %v1038_v44 = vunpack.c.l.bf16 %v1075_v36  ;;  %v1409_v54 = vld [vmem:[%s1384_s26 + $0x58] sm:$0xff]   ;;  %v1419_v0 = vld [vmem:[%s1384_s26 + $0x50] sm:$0xff]  }
  0x20   : > { %v987_v3 = vcombine.low %v384_v60, %v385_v61  ;;  %v371_v11 = vmul.bf16 %v1308_v16, %v328_v1  ;;  %v386_v12 = vmul.bf16 %v1308_v16, %v343_v4  ;;  %v387_v13 = vmul.bf16 %v1308_v16, %v344_v5 }
  0x21   : > { %v372_v14 = vmul.bf16 %v1308_v16, %v329_v6  ;;  %v373_v15 = vmul.bf16 %v1308_v16, %v330_v7  ;;  %v389_v18 = vmul.bf16 %v1308_v16, %v346_v9  ;;  %v374_v27 = vmul.bf16 %v1308_v16, %v331_v21 }
  0x22   : > { %1118 = vmatpush3.bf16.msra.mxu0 %v1200_v17  ;;  %1168 = vmatpush3.bf16.msra.mxu1 %v1200_v17  ;;  %v388_v17 = vmul.bf16 %v1308_v16, %v345_v8  ;;  %v980_v19 = vcombine.low %v370_v10, %v371_v11  ;;  %v988_v20 = vcombine.low %v386_v12, %v387_v13  ;;  %v1043_v48 = vunpack.c.h.bf16 %v1076_v34 }
  0x23   : > { %1119 = vmatprep.subr.bf16.mxu0 %v1201_v24  ;;  %1161 = vmatprep.subr.bf16.mxu1 %v1201_v24  ;;  %v981_v22 = vcombine.low %v372_v14, %v373_v15  ;;  %v391_v30 = vmul.bf16 %v1308_v16, %v348_v26  ;;  %v1007_v57 = vunpack.c.h.bf16 %v1005_v35  ;;  %v1039_v58 = vunpack.c.h.bf16 %v1075_v36  ;;  %v1440_v26 = vld [vmem:[%s1384_s26 + $0x28] sm:$0xff]   ;;  %v1452_v36 = vld [vmem:[%s1384_s26 + $0x20] sm:$0xff]  }
  0x24   : > { %v989_v23 = vcombine.low %v388_v17, %v389_v18  ;;  %v1050_v4 = vunpack.c.l.bf16 %v1409_v54  ;;  %v1046_v12 = vunpack.c.l.bf16 %v1419_v0  ;;  %v1051_v21 = vunpack.c.h.bf16 %v1409_v54 }
  0x26   : > { %1120 = vmatpush3.bf16.msra.mxu0 %v1201_v24  ;;  %1169 = vmatpush3.bf16.msra.mxu1 %v1201_v24  ;;  %v332_v24 = vld [vmem:[%s1299_s11 + $0x3c] sm:$0xf] }
  0x27   : > { %1121 = vmatprep.subr.bf16.mxu0 %v1202_v25  ;;  %1162 = vmatprep.subr.bf16.mxu1 %v1202_v25  ;;  %v375_v28 = vmul.bf16 %v1308_v16, %v332_v24 }
  0x29   : > { %v982_v31 = vcombine.low %v374_v27, %v375_v28  ;;  %v1443_v27 = vld [vmem:[%s1384_s26 + $0x68] sm:$0xff]  }
  0x2a   : > { %1122 = vmatpush3.bf16.msra.mxu0 %v1202_v25  ;;  %1170 = vmatpush3.bf16.msra.mxu1 %v1202_v25  ;;  %v347_v25 = vld [vmem:[%s1299_s11 + $0x78] sm:$0xf] }
  0x2b   : > { %v390_v29 = vmul.bf16 %v1308_v16, %v347_v25  ;;  %v1391_v16 = vld [vmem:[%s1521_s3] ss:$0 sm:$0xff] }
  0x2d   : > { %1124 = vmatmul.mubr.bf16.vlgmr.msra.gmra.mxu0 %v976_v42  ;;  %1140 = vmatmul.mubr.bf16.vlgmr.msra.gmra.mxu1 %v984_v43  ;;  %v990_v32 = vcombine.low %v390_v29, %v391_v30  ;;  %v1006_v43 = vunpack.c.l.bf16 %v1005_v35 }
  0x2e   : > { %1127 = vmatprep.mubr.bf16.mxu0 %v977_v46  ;;  %1143 = vmatprep.mubr.bf16.mxu1 %v985_v47  ;;  %v1011_v47 = vunpack.c.h.bf16 %v1068_v33 }
  0x35   : > { %1128 = vmatmul.mubr.bf16.gmra.mxu0 %v978_v62  ;;  %1144 = vmatmul.mubr.bf16.gmra.mxu1 %v986_v63  ;;  %v1416_v63 = vld [vmem:[%s1384_s26 + $0x10] sm:$0xff]  }
  0x36   : > { %1131 = vmatprep.mubr.bf16.mxu0 %v979_v2  ;;  %1147 = vmatprep.mubr.bf16.mxu1 %v987_v3  ;;  %v1018_v3 = vunpack.c.l.bf16 %v1406_v53  ;;  %v1014_v11 = vunpack.c.l.bf16 %v1416_v63  ;;  %v1015_v30 = vunpack.c.h.bf16 %v1416_v63  ;;  %v1082_v63 = vld [vmem:[%s1384_s26 + $0x78] sm:$0xff]  }
  0x3d   : > { %1132 = vmatmul.mubr.bf16.gmra.mxu0 %v980_v19  ;;  %1148 = vmatmul.mubr.bf16.gmra.mxu1 %v988_v20  ;;  %v1019_v20 = vunpack.c.h.bf16 %v1406_v53 }
  0x3e   : > { %1135 = vmatprep.mubr.bf16.mxu0 %v981_v22  ;;  %1151 = vmatprep.mubr.bf16.mxu1 %v989_v23 }
  0x45   : > { %1136 = vmatmul.mubr.bf16.gmra.mxu0 %v982_v31  ;;  %1152 = vmatmul.mubr.bf16.gmra.mxu1 %v990_v32  ;;  %v1047_v31 = vunpack.c.h.bf16 %v1419_v0 }
  0xed   : > { %v1125_v39 = vpop.f32.mrf.mxu0  ;;  %v1141_v40 = vpop.f32.mrf.mxu1 }
  0xee   : > { %v602_v41 = vadd.f32 %v1125_v39, %v1391_v16  ;;  %v666_v42 = vadd.f32 %v1141_v40, %v1391_v16  ;;  %v1026_v40 = vunpack.c.l.bf16 %v1440_v26 }
  0xef   : > { %v593_v45 = vpop.f32.mrf.mxu0  ;;  %v657_v46 = vpop.f32.mrf.mxu1 }
  0xf0   : > { %v786_v49 = vadd.f32 %v1010_v37, %v602_v41  ;;  %v802_v50 = vadd.f32 %v1042_v38, %v666_v42  ;;  %v594_v51 = vadd.f32 %v1391_v16, %v593_v45  ;;  %v658_v52 = vadd.f32 %v1391_v16, %v657_v46  ;;  %v1455_v37 = vld [vmem:[%s1384_s26 + $0x60] sm:$0xff]  }
  0xf1   : > { %v1126_v55 = vpop.f32.mrf.mxu0  ;;  %v1142_v56 = vpop.f32.mrf.mxu1  ;;  %v1058_v41 = vunpack.c.l.bf16 %v1443_v27 }
  0xf2   : > { %818 = vst [vmem:[%s1401_s7 + $0x10] sm:$0xff] %v786_v49  ;;  %834 = vst [vmem:[%s1401_s7 + $0x90] sm:$0xff] %v802_v50  ;;  %v784_v59 = vadd.f32 %v1006_v43, %v594_v51  ;;  %v800_v60 = vadd.f32 %v1038_v44, %v658_v52  ;;  %v605_v61 = vadd.f32 %v1126_v55, %v1391_v16  ;;  %v1054_v49 = vunpack.c.l.bf16 %v1455_v37 }
  0xf3   : > { %v669_v62 = vadd.f32 %v1142_v56, %v1391_v16  ;;  %v596_v1 = vpop.f32.mrf.mxu0  ;;  %v660_v2 = vpop.f32.mrf.mxu1  ;;  %v1027_v56 = vunpack.c.h.bf16 %v1440_v26 }
  0xf4   : > { %816 = vst [vmem:[%s1401_s7] sm:$0xff] %v784_v59  ;;  %832 = vst [vmem:[%s1401_s7 + $0x80] sm:$0xff] %v800_v60  ;;  %v787_v5 = vadd.f32 %v1011_v47, %v605_v61  ;;  %v597_v7 = vadd.f32 %v1391_v16, %v596_v1  ;;  %v661_v8 = vadd.f32 %v1391_v16, %v660_v2  ;;  %v1023_v2 = vunpack.c.h.bf16 %v1452_v36 }
  0xf5   : > { %v803_v6 = vadd.f32 %v1043_v48, %v669_v62  ;;  %v1129_v9 = vpop.f32.mrf.mxu0  ;;  %v1145_v10 = vpop.f32.mrf.mxu1  ;;  %v1022_v48 = vunpack.c.l.bf16 %v1452_v36  ;;  %v1074_v62 = vld [vmem:[%s1384_s26 + $0x38] sm:$0xff]  }
  0xf6   : > { %819 = vst [vmem:[%s1401_s7 + $0x18] sm:$0xff] %v787_v5  ;;  %v785_v13 = vadd.f32 %v1007_v57, %v597_v7  ;;  %v801_v14 = vadd.f32 %v1039_v58, %v661_v8  ;;  %v618_v15 = vadd.f32 %v1129_v9, %v1391_v16  ;;  %v682_v17 = vadd.f32 %v1145_v10, %v1391_v16  ;;  %v1073_v8 = vld [vmem:[%s1384_s26 + $0x30] sm:$0xff]  }
  0xf7   : > { %835 = vst [vmem:[%s1401_s7 + $0x98] sm:$0xff] %v803_v6  ;;  %v609_v18 = vpop.f32.mrf.mxu0  ;;  %v673_v19 = vpop.f32.mrf.mxu1  ;;  %v1059_v57 = vunpack.c.h.bf16 %v1443_v27  ;;  %v1081_v9 = vld [vmem:[%s1384_s26 + $0x70] sm:$0xff]  }
  0xf8   : > { %817 = vst [vmem:[%s1401_s7 + $0x8] sm:$0xff] %v785_v13  ;;  %833 = vst [vmem:[%s1401_s7 + $0x88] sm:$0xff] %v801_v14  ;;  %v790_v22 = vadd.f32 %v1018_v3, %v618_v15  ;;  %v806_v23 = vadd.f32 %v1050_v4, %v682_v17  ;;  %v610_v24 = vadd.f32 %v1391_v16, %v609_v18  ;;  %v1055_v3 = vunpack.c.h.bf16 %v1455_v37 }
  0xf9   : > { %v674_v25 = vadd.f32 %v1391_v16, %v673_v19  ;;  %v1130_v28 = vpop.f32.mrf.mxu0  ;;  %v1146_v29 = vpop.f32.mrf.mxu1  ;;  %v1066_v13 = vunpack.c.l.bf16 %v1082_v63  ;;  %v1031_v37 = vunpack.c.h.bf16 %v1073_v8 }
  0xfa   : > { %822 = vst [vmem:[%s1401_s7 + $0x30] sm:$0xff] %v790_v22  ;;  %838 = vst [vmem:[%s1401_s7 + $0xb0] sm:$0xff] %v806_v23  ;;  %v788_v32 = vadd.f32 %v1014_v11, %v610_v24  ;;  %v621_v34 = vadd.f32 %v1130_v28, %v1391_v16  ;;  %v685_v35 = vadd.f32 %v1146_v29, %v1391_v16  ;;  %v1062_v22 = vunpack.c.l.bf16 %v1081_v9 }
  0xfb   : > { %v804_v33 = vadd.f32 %v1046_v12, %v674_v25  ;;  %v612_v38 = vpop.f32.mrf.mxu0  ;;  %v676_v39 = vpop.f32.mrf.mxu1  ;;  %v1034_v12 = vunpack.c.l.bf16 %v1074_v62  ;;  %v1035_v29 = vunpack.c.h.bf16 %v1074_v62 }
  0xfc   : > { %820 = vst [vmem:[%s1401_s7 + $0x20] sm:$0xff] %v788_v32  ;;  %v791_v42 = vadd.f32 %v1019_v20, %v621_v34  ;;  %v807_v43 = vadd.f32 %v1051_v21, %v685_v35  ;;  %v613_v44 = vadd.f32 %v1391_v16, %v612_v38  ;;  %v677_v45 = vadd.f32 %v1391_v16, %v676_v39 }
  0xfd   : > { %836 = vst [vmem:[%s1401_s7 + $0xa0] sm:$0xff] %v804_v33  ;;  %v1133_v46 = vpop.f32.mrf.mxu0  ;;  %v1149_v47 = vpop.f32.mrf.mxu1  ;;  %v1030_v21 = vunpack.c.l.bf16 %v1073_v8  ;;  %v1063_v38 = vunpack.c.h.bf16 %v1081_v9 }
  0xfe   : > { %823 = vst [vmem:[%s1401_s7 + $0x38] sm:$0xff] %v791_v42  ;;  %839 = vst [vmem:[%s1401_s7 + $0xb8] sm:$0xff] %v807_v43  ;;  %v789_v50 = vadd.f32 %v1015_v30, %v613_v44  ;;  %v805_v51 = vadd.f32 %v1047_v31, %v677_v45  ;;  %v634_v52 = vadd.f32 %v1133_v46, %v1391_v16  ;;  %v1067_v30 = vunpack.c.h.bf16 %v1082_v63 }
  0xff   : > { %v698_v53 = vadd.f32 %v1149_v47, %v1391_v16  ;;  %v625_v54 = vpop.f32.mrf.mxu0  ;;  %v689_v55 = vpop.f32.mrf.mxu1 }
 0x100   : > { %821 = vst [vmem:[%s1401_s7 + $0x28] sm:$0xff] %v789_v50  ;;  %837 = vst [vmem:[%s1401_s7 + $0xa8] sm:$0xff] %v805_v51  ;;  %v794_v58 = vadd.f32 %v1026_v40, %v634_v52  ;;  %v626_v60 = vadd.f32 %v1391_v16, %v625_v54  ;;  %v690_v61 = vadd.f32 %v1391_v16, %v689_v55 }
 0x101   : > { %v810_v59 = vadd.f32 %v1058_v41, %v698_v53  ;;  %v1134_v0 = vpop.f32.mrf.mxu0  ;;  %v1150_v1 = vpop.f32.mrf.mxu1 }
 0x102   : > { %826 = vst [vmem:[%s1401_s7 + $0x50] sm:$0xff] %v794_v58  ;;  %v792_v4 = vadd.f32 %v1022_v48, %v626_v60  ;;  %v808_v5 = vadd.f32 %v1054_v49, %v690_v61  ;;  %v637_v6 = vadd.f32 %v1134_v0, %v1391_v16  ;;  %v701_v7 = vadd.f32 %v1150_v1, %v1391_v16 }
 0x103   : > { %842 = vst [vmem:[%s1401_s7 + $0xd0] sm:$0xff] %v810_v59  ;;  %v628_v10 = vpop.f32.mrf.mxu0  ;;  %v692_v11 = vpop.f32.mrf.mxu1 }
 0x104   : > { %824 = vst [vmem:[%s1401_s7 + $0x40] sm:$0xff] %v792_v4  ;;  %840 = vst [vmem:[%s1401_s7 + $0xc0] sm:$0xff] %v808_v5  ;;  %v795_v14 = vadd.f32 %v1027_v56, %v637_v6  ;;  %v811_v15 = vadd.f32 %v1059_v57, %v701_v7  ;;  %v629_v17 = vadd.f32 %v1391_v16, %v628_v10 }
 0x105   : > { %v693_v18 = vadd.f32 %v1391_v16, %v692_v11  ;;  %v1137_v19 = vpop.f32.mrf.mxu0  ;;  %v1153_v20 = vpop.f32.mrf.mxu1 }
 0x106   : > { %827 = vst [vmem:[%s1401_s7 + $0x58] sm:$0xff] %v795_v14  ;;  %843 = vst [vmem:[%s1401_s7 + $0xd8] sm:$0xff] %v811_v15  ;;  %v793_v23 = vadd.f32 %v1023_v2, %v629_v17  ;;  %v650_v25 = vadd.f32 %v1137_v19, %v1391_v16  ;;  %v714_v26 = vadd.f32 %v1153_v20, %v1391_v16 }
 0x107   : > { %v809_v24 = vadd.f32 %v1055_v3, %v693_v18  ;;  %v641_v27 = vpop.f32.mrf.mxu0  ;;  %v705_v28 = vpop.f32.mrf.mxu1 }
 0x108   : > { %825 = vst [vmem:[%s1401_s7 + $0x48] sm:$0xff] %v793_v23  ;;  %v798_v31 = vadd.f32 %v1034_v12, %v650_v25  ;;  %v814_v32 = vadd.f32 %v1066_v13, %v714_v26  ;;  %v642_v33 = vadd.f32 %v1391_v16, %v641_v27  ;;  %v706_v34 = vadd.f32 %v1391_v16, %v705_v28 }
 0x109   : > { %841 = vst [vmem:[%s1401_s7 + $0xc8] sm:$0xff] %v809_v24  ;;  %v1138_v35 = vpop.f32.mrf.mxu0  ;;  %v1154_v36 = vpop.f32.mrf.mxu1 }
 0x10a   : > { %830 = vst [vmem:[%s1401_s7 + $0x70] sm:$0xff] %v798_v31  ;;  %846 = vst [vmem:[%s1401_s7 + $0xf0] sm:$0xff] %v814_v32  ;;  %v796_v39 = vadd.f32 %v1030_v21, %v642_v33  ;;  %v812_v40 = vadd.f32 %v1062_v22, %v706_v34  ;;  %v653_v41 = vadd.f32 %v1138_v35, %v1391_v16 }
 0x10b   : > { %v717_v42 = vadd.f32 %v1154_v36, %v1391_v16  ;;  %v644_v43 = vpop.f32.mrf.mxu0  ;;  %v708_v44 = vpop.f32.mrf.mxu1 }
 0x10c   : > { %828 = vst [vmem:[%s1401_s7 + $0x60] sm:$0xff] %v796_v39  ;;  %844 = vst [vmem:[%s1401_s7 + $0xe0] sm:$0xff] %v812_v40  ;;  %v799_v45 = vadd.f32 %v1035_v29, %v653_v41  ;;  %v645_v47 = vadd.f32 %v1391_v16, %v644_v43  ;;  %v709_v48 = vadd.f32 %v1391_v16, %v708_v44 }
 0x10d   : > { %v815_v46 = vadd.f32 %v1067_v30, %v717_v42 }
 0x10e   : > { %831 = vst [vmem:[%s1401_s7 + $0x78] sm:$0xff] %v799_v45  ;;  %v797_v49 = vadd.f32 %v1031_v37, %v645_v47  ;;  %v813_v50 = vadd.f32 %v1063_v38, %v709_v48 }
 0x10f   : > { %847 = vst [vmem:[%s1401_s7 + $0xf8] sm:$0xff] %v815_v46 }
 0x110   : > { %829 = vst [vmem:[%s1401_s7 + $0x68] sm:$0xff] %v797_v49  ;;  %845 = vst [vmem:[%s1401_s7 + $0xe8] sm:$0xff] %v813_v50 }
 0x111 PF: > { %s15_s20 = sadd.s32 1, %s1225_s20   ;;  %s1524_s18 = smov %s1221_s19 }
 0x112   : > { %p12_p5 = scmp.ge.s32.totalorder %s15_s20, 4   ;;  %s1525_s19 = smov %s1527_s21 }
 0x114   :  { %14 = sbr.rel (!%p12_p5) target bundleno = 2 (0x2), region = 76 }

// kernel: mbconv_forward.3
= control target key start
LH: loop header
LB: loop body
LE: loop exit
PB: predicated region body
PF: predicated region fallthrough
CT: control target
= control target key end

     0   :  { %s2503_s27 = smov 0   ;;  %s2505_s28 = smov 0   ;;  %s3255_s0 = inlined_call_operand.vmem [shape: bf16[2,16,16,128], index: 0, kind: input, shape index: {}, may-alias: {0,1,2}]   ;;  %s3256_s1 = inlined_call_operand.vmem [shape: bf16[2,16,16,128], index: 1, kind: input, shape index: {}, may-alias: {0,1,2}]   ;;  %s3257_s2 = inlined_call_operand.vmem [shape: bf16[2,16,16,128], index: 2, kind: input, shape index: {}, may-alias: {0,1,2}]   ;;  %s3258_s3 = inlined_call_operand.vmem [shape: bf16[128,128], index: 3, kind: input, shape index: {}]   ;;  %s3259_s4 = inlined_call_operand.vmem [shape: f32[1,128], index: 4, kind: input, shape index: {}]   ;;  %s3260_s5 = inlined_call_operand.vmem [shape: f32[9,128], index: 5, kind: input, shape index: {}]   ;;  %s3261_s6 = inlined_call_operand.vmem [shape: f32[1,128], index: 6, kind: input, shape index: {}]   ;;  %s3262_s7 = inlined_call_operand.vmem [shape: bf16[2,16,16,128], index: 7, kind: output, shape index: {0}]   ;;  %s3263_s8 = inlined_call_operand.vmem [shape: f32[4,1,128], index: 8, kind: output, shape index: {1}]  }
   0x1   :  { %s2507_s29 = smov 0   ;;  %s2509_s30 = smov 0  }
   0x2   :  { %s2511_s9 = smov 0  }
   0x3 LB: > { %s28_s10 = sadd.s32 1, %s2441_s29  ;;  %s31_s11 = sadd.s32 1, %s2445_s30  ;;  %s2449_s9 = sphi %s2511_s9, %s19_s9   ;;  %s2445_s30 = sphi %s2509_s30, %s3269_s30   ;;  %s2441_s29 = sphi %s2507_s29, %s3268_s29   ;;  %s2437_s28 = sphi %s2505_s28, %s3267_s28   ;;  %s2433_s27 = sphi %s2503_s27, %s3266_s27  }
   0x4   : > { %p29_p0 = scmp.ge.s32.totalorder %s28_s10, 2  ;;  %p1903_p1 = scmp.ge.s32.totalorder %s2449_s9, 1 }
   0x5   : > { %p355_p2 = scmp.lt.s32.totalorder %s2449_s9, 5 }
   0x6   : > { %s3271_s10 = smov (%p29_p0, %s28_s10), 0  ;;  %s3273_s11 = smov (!%p29_p0, %s31_s11), %s2445_s30 }
   0x7   : > { %p356_p3 = pnand %p1903_p1, %p355_p2  ;;  %p33_p4 = scmp.ge.s32.totalorder %s3273_s11, 2 }
   0x8   : > { %s1929_s12 = sshll.u32 (!%p356_p3), %s2437_s28, 1  ;;  %s2545_s16 = sshll.u32 (!%p356_p3), %s2433_s27, 3 }
   0x9   : > { %s3275_s11 = smov (%p33_p4, %s3273_s11), 0  ;;  %359 = sbr.rel (%p356_p3) target bundleno = 1003 (0x3eb), region = 48 }
   0xa   : > { %s487_s13 = sadd.s32 (!%p356_p3), %s2433_s27, %s1929_s12  ;;  %s1905_s19 = sadd.s32 (!%p356_p3), 4294967295, %s2545_s16 }
   0xb   : > { %p488_p5 = scmp.lt.s32.totalorder (!%p356_p3), %s487_s13, 3  ;;  %p432_p6 = scmp.gt.s32.totalorder (!%p356_p3), %s1905_s19, 0 }
   0xc   : > { %p434_p7 = scmp.lt.s32.totalorder (!%p356_p3), %s2437_s28, 1  ;;  %p1906_p8 = scmp.lt.s32.totalorder (!%p356_p3), %s1905_s19, 15 }
   0xd   : > { %p450_p9 = scmp.lt.s32.totalorder (!%p356_p3), %s2545_s16, 15  ;;  %s2016_s15 = sadd.s32 (!%p356_p3), 8, %s2545_s16 }
   0xe   : > { %v2451_v0 = vmov 0.0   ;;  %v2542_v1 = vld [vmem:[%s3258_s3 + $0x38] sm:$0xff]   ;;  %v2550_v2 = vld [vmem:[%s3258_s3 + $0x30] sm:$0xff]   ;;  %s3277_s13 = smov (!%p488_p5, %s487_s13), 3  ;;  %v2564_v3 = vld [vmem:[%s3258_s3 + $0x28] sm:$0xff]   ;;  %s3279_s28 = smov (!%p434_p7, %s2437_s28), 1 }
   0xf   : > { %511 = vst [vmem:[#allocation2 + $0x7] sm:$0x1] %v2451_v0  ;;  %512 = vst [vmem:[#allocation2 + $0x27] sm:$0x1] %v2451_v0  ;;  %2114 = vmatprep.subr.bf16.mxu0 %v2542_v1  ;;  %2186 = vmatprep.subr.bf16.mxu1 %v2542_v1  ;;  %s433_s25 = scalar_select %p432_p6, %s1905_s19, 0  ;;  %v2579_v4 = vld [vmem:[%s3258_s3 + $0x20] sm:$0xff]  }
  0x10   : > { %513 = vst [vmem:[#allocation2 + $0x47] sm:$0x1] %v2451_v0  ;;  %514 = vst [vmem:[#allocation2 + $0x67] sm:$0x1] %v2451_v0  ;;  %2115 = vmatpush3.bf16.msra.mxu0 %v2542_v1  ;;  %2194 = vmatpush3.bf16.msra.mxu1 %v2542_v1  ;;  %s2582_s14 = sshll.u32 %s3279_s28, 5  ;;  %s3283_s16 = smov (!%p450_p9, %s2545_s16), 15 }
  0x11   : > { %515 = vst [vmem:[#allocation2 + $0x87] sm:$0x1] %v2451_v0  ;;  %516 = vst [vmem:[#allocation2 + $0xa7] sm:$0x1] %v2451_v0  ;;  %2116 = vmatprep.subr.bf16.mxu0 %v2550_v2  ;;  %2187 = vmatprep.subr.bf16.mxu1 %v2550_v2  ;;  %s3281_s25 = smov (!%p1906_p8, %s433_s25), 15  ;;  %v2593_v5 = vld [vmem:[%s3258_s3 + $0x18] sm:$0xff]  }
  0x12   : > { %517 = vst [vmem:[#allocation2 + $0xc7] sm:$0x1] %v2451_v0  ;;  %518 = vst [vmem:[#allocation2 + $0xe7] sm:$0x1] %v2451_v0  ;;  %s1911_s28 = sshll.u32 %s3281_s25, 1  ;;  %p2595_p10 = scmp.lt.s32.totalorder %s2016_s15, 15 }
  0x13   : > { %519 = vst [vmem:[#allocation2 + $0x107] sm:$0x1] %v2451_v0  ;;  %520 = vst [vmem:[#allocation2 + $0x127] sm:$0x1] %v2451_v0  ;;  %s440_s20 = sadd.s32 %s2582_s14, %s1911_s28  ;;  %s1915_s21 = sshll.u32 %s3283_s16, 1  ;;  %v2613_v6 = vld [vmem:[%s3258_s3 + $0x10] sm:$0xff]  }
  0x14   : > { %521 = vst [vmem:[#allocation2 + $0x18] sm:$0x1] %v2451_v0  ;;  %522 = vst [vmem:[#allocation2 + $0x38] sm:$0x1] %v2451_v0  ;;  %2117 = vmatpush3.bf16.msra.mxu0 %v2550_v2  ;;  %2195 = vmatpush3.bf16.msra.mxu1 %v2550_v2  ;;  %s1913_s22 = sshll.u32 %s440_s20, 2  ;;  %s454_s23 = sadd.s32 %s1915_s21, %s2582_s14  ;;  %v2638_v9 = vld [vmem:[%s3258_s3 + $0x8] sm:$0xff]  }
  0x15   : > { %523 = vst [vmem:[#allocation2 + $0x58] sm:$0x1] %v2451_v0  ;;  %524 = vst [vmem:[#allocation2 + $0x78] sm:$0x1] %v2451_v0  ;;  %2118 = vmatprep.subr.bf16.mxu0 %v2564_v3  ;;  %2188 = vmatprep.subr.bf16.mxu1 %v2564_v3  ;;  %s2606_s17 = scalar_lea.vmem %s3255_s0, %s1913_s22  ;;  %s1917_s25 = sshll.u32 %s454_s23, 2  ;;  %v2650_v10 = vld [vmem:[%s3258_s3] sm:$0xff]  }
  0x16   : > { %525 = vst [vmem:[#allocation2 + $0x98] sm:$0x1] %v2451_v0  ;;  %526 = vst [vmem:[#allocation2 + $0xb8] sm:$0x1] %v2451_v0  ;;  %s2618_s21 = scalar_lea.vmem %s3256_s1, %s1917_s25  ;;  %s2623_s22 = scalar_lea.vmem %s3262_s7, %s1917_s25  ;;  %v2671_v17 = vld [vmem:[%s3259_s4] ss:$0 sm:$0xff] }
  0x17   : > { %527 = vst [vmem:[#allocation2 + $0xd8] sm:$0x1] %v2451_v0  ;;  %528 = vst [vmem:[#allocation2 + $0xf8] sm:$0x1] %v2451_v0  ;;  %s3285_s15 = smov (!%p2595_p10, %s2016_s15), 15  ;;  %v2257_v7 = vld [vmem:[%s2618_s21] sm:$0xff]  }
  0x18   : > { %529 = vst [vmem:[#allocation2 + $0x118] sm:$0x1] %v2451_v0  ;;  %530 = vst [vmem:[#allocation2 + $0x138] sm:$0x1] %v2451_v0  ;;  %2119 = vmatpush3.bf16.msra.mxu0 %v2564_v3  ;;  %2196 = vmatpush3.bf16.msra.mxu1 %v2564_v3  ;;  %v2258_v8 = vld [vmem:[%s2618_s21 + $0x20] sm:$0xff]   ;;  %s3287_s15 = smov (!%p2595_p10, %s3285_s15), 15 }
  0x19   : > { %2120 = vmatprep.subr.bf16.mxu0 %v2579_v4  ;;  %2189 = vmatprep.subr.bf16.mxu1 %v2579_v4  ;;  %s1922_s12 = sshll.u32 %s3287_s15, 1  ;;  %v2259_v11 = vld [vmem:[%s2618_s21 + $0x8] sm:$0xff]   ;;  %v2261_v13 = vld [vmem:[%s2618_s21 + $0x10] sm:$0xff]   ;;  %v2263_v15 = vld [vmem:[%s2618_s21 + $0x18] sm:$0xff]   ;;  %p1963_p11 = scmp.ne.s32.totalorder %s2433_s27, 0 }
  0x1a   : > { %2130 = vmatprep.mubr.bf16.mxu0 %v2257_v7  ;;  %2138 = vmatprep.mubr.bf16.mxu1 %v2258_v8  ;;  %s468_s25 = sadd.s32 %s1922_s12, %s2582_s14  ;;  %v2260_v12 = vld [vmem:[%s2618_s21 + $0x28] sm:$0xff]   ;;  %v2262_v14 = vld [vmem:[%s2618_s21 + $0x30] sm:$0xff]   ;;  %v2264_v16 = vld [vmem:[%s2618_s21 + $0x38] sm:$0xff]  }
  0x1b   : > { %s2643_s19 = sshll.u32 %s468_s25, 2 }
  0x1c   : > { %2121 = vmatpush3.bf16.msra.mxu0 %v2579_v4  ;;  %2197 = vmatpush3.bf16.msra.mxu1 %v2579_v4  ;;  %s470_s16 = scalar_lea.vmem %s3257_s2, %s2643_s19 }
  0x1d   : > { %2122 = vmatprep.subr.bf16.mxu0 %v2593_v5  ;;  %2190 = vmatprep.subr.bf16.mxu1 %v2593_v5 }
  0x20   : > { %2123 = vmatpush3.bf16.msra.mxu0 %v2593_v5  ;;  %2198 = vmatpush3.bf16.msra.mxu1 %v2593_v5 }
  0x21   : > { %2124 = vmatprep.subr.bf16.mxu0 %v2613_v6  ;;  %2191 = vmatprep.subr.bf16.mxu1 %v2613_v6 }
  0x24   : > { %2125 = vmatpush3.bf16.msra.mxu0 %v2613_v6  ;;  %2199 = vmatpush3.bf16.msra.mxu1 %v2613_v6 }
  0x25   : > { %2126 = vmatprep.subr.bf16.mxu0 %v2638_v9  ;;  %2192 = vmatprep.subr.bf16.mxu1 %v2638_v9 }
  0x28   : > { %2127 = vmatpush3.bf16.msra.mxu0 %v2638_v9  ;;  %2200 = vmatpush3.bf16.msra.mxu1 %v2638_v9 }
  0x29   : > { %2128 = vmatprep.subr.bf16.mxu0 %v2650_v10  ;;  %2193 = vmatprep.subr.bf16.mxu1 %v2650_v10 }
  0x2c   : > { %2129 = vmatpush3.bf16.msra.mxu0 %v2650_v10  ;;  %2201 = vmatpush3.bf16.msra.mxu1 %v2650_v10 }
  0x2f   : > { %2131 = vmatmul.mubr.bf16.vlgmr.msra.gmra.mxu0 %v2259_v11  ;;  %2139 = vmatmul.mubr.bf16.vlgmr.msra.gmra.mxu1 %v2260_v12 }
  0x30   : > { %2134 = vmatprep.mubr.bf16.mxu0 %v2261_v13  ;;  %2142 = vmatprep.mubr.bf16.mxu1 %v2262_v14 }
  0x37   : > { %2135 = vmatmul.mubr.bf16.gmra.mxu0 %v2263_v15  ;;  %2143 = vmatmul.mubr.bf16.gmra.mxu1 %v2264_v16 }
  0xef   : > { %v2132_v18 = vpop.f32.mrf.mxu0  ;;  %v2140_v19 = vpop.f32.mrf.mxu1 }
  0xf0   : > { %v2674_v20 = vadd.f32 %v2132_v18, %v2671_v17  ;;  %v2677_v21 = vadd.f32 %v2140_v19, %v2671_v17 }
  0xf1   : > { %v683_v22 = vpop.f32.mrf.mxu0  ;;  %v715_v23 = vpop.f32.mrf.mxu1 }
  0xf2   : > { %v1949_v24 = vmul.f32 -1.442695, %v2674_v20  ;;  %v1957_v25 = vmul.f32 -1.442695, %v2677_v21  ;;  %v2682_v26 = vadd.f32 %v2671_v17, %v683_v22  ;;  %v2685_v27 = vadd.f32 %v2671_v17, %v715_v23 }
  0xf3   : > { %v2133_v28 = vpop.f32.mrf.mxu0  ;;  %v2141_v29 = vpop.f32.mrf.mxu1 }
  0xf4   : > { %2265 = vpow2.f32 %v1949_v24  ;;  %v1947_v30 = vmul.f32 -1.442695, %v2682_v26  ;;  %v1955_v31 = vmul.f32 -1.442695, %v2685_v27  ;;  %v2690_v32 = vadd.f32 %v2133_v28, %v2671_v17 }
  0xf5   : > { %2267 = vpow2.f32 %v1957_v25  ;;  %v2693_v33 = vadd.f32 %v2141_v29, %v2671_v17  ;;  %v686_v34 = vpop.f32.mrf.mxu0  ;;  %v718_v35 = vpop.f32.mrf.mxu1 }
  0xf6   : > { %2269 = vpow2.f32 %v1947_v30  ;;  %v1950_v36 = vmul.f32 -1.442695, %v2690_v32  ;;  %v2697_v37 = vadd.f32 %v2671_v17, %v686_v34  ;;  %v2700_v38 = vadd.f32 %v2671_v17, %v718_v35 }
  0xf7   : > { %2271 = vpow2.f32 %v1955_v31  ;;  %v1958_v39 = vmul.f32 -1.442695, %v2693_v33  ;;  %v2136_v40 = vpop.f32.mrf.mxu0  ;;  %v2144_v41 = vpop.f32.mrf.mxu1 }
  0xf8   : > { %2273 = vpow2.f32 %v1950_v36  ;;  %v1948_v42 = vmul.f32 -1.442695, %v2697_v37  ;;  %v1956_v43 = vmul.f32 -1.442695, %v2700_v38  ;;  %v2706_v44 = vadd.f32 %v2136_v40, %v2671_v17 }
  0xf9   : > { %2275 = vpow2.f32 %v1958_v39  ;;  %v2709_v45 = vadd.f32 %v2144_v41, %v2671_v17  ;;  %v699_v46 = vpop.f32.mrf.mxu0  ;;  %v731_v47 = vpop.f32.mrf.mxu1 }
  0xfa   : > { %2277 = vpow2.f32 %v1948_v42  ;;  %v1953_v48 = vmul.f32 -1.442695, %v2706_v44  ;;  %v2713_v49 = vadd.f32 %v2671_v17, %v699_v46  ;;  %v2716_v50 = vadd.f32 %v2671_v17, %v731_v47 }
  0xfb   : > { %2279 = vpow2.f32 %v1956_v43  ;;  %v1961_v51 = vmul.f32 -1.442695, %v2709_v45  ;;  %v2137_v52 = vpop.f32.mrf.mxu0  ;;  %v2145_v53 = vpop.f32.mrf.mxu1 }
  0xfc   : > { %2281 = vpow2.f32 %v1953_v48  ;;  %v1951_v54 = vmul.f32 -1.442695, %v2713_v49  ;;  %v1959_v55 = vmul.f32 -1.442695, %v2716_v50  ;;  %v2722_v56 = vadd.f32 %v2137_v52, %v2671_v17 }
  0xfd   : > { %2283 = vpow2.f32 %v1961_v51  ;;  %v2725_v57 = vadd.f32 %v2145_v53, %v2671_v17  ;;  %v702_v58 = vpop.f32.mrf.mxu0  ;;  %v734_v59 = vpop.f32.mrf.mxu1 }
  0xfe   : > { %2285 = vpow2.f32 %v1951_v54  ;;  %v1954_v60 = vmul.f32 -1.442695, %v2722_v56  ;;  %v2729_v61 = vadd.f32 %v2671_v17, %v702_v58  ;;  %v2732_v62 = vadd.f32 %v2671_v17, %v734_v59 }
  0xff   : > { %2287 = vpow2.f32 %v1959_v55  ;;  %v1962_v63 = vmul.f32 -1.442695, %v2725_v57 }
 0x100   : > { %2289 = vpow2.f32 %v1954_v60  ;;  %v1952_v0 = vmul.f32 -1.442695, %v2729_v61  ;;  %v1960_v7 = vmul.f32 -1.442695, %v2732_v62 }
 0x101   : > { %v2266_v8 = vpop.eup %2265  ;;  %2291 = vpow2.f32 %v1962_v63 }
 0x102   : > { %v2268_v11 = vpop.eup %2267  ;;  %v796_v12 = vadd.f32 1.0, %v2266_v8  ;;  %2293 = vpow2.f32 %v1952_v0 }
 0x103   : > { %v2270_v13 = vpop.eup %2269  ;;  %v804_v14 = vadd.f32 1.0, %v2268_v11  ;;  %2295 = vpow2.f32 %v1960_v7 }
 0x104   : > { %v2272_v15 = vpop.eup %2271  ;;  %2297 = vrcp.f32 %v796_v12  ;;  %v794_v16 = vadd.f32 1.0, %v2270_v13 }
 0x105   : > { %v2274_v18 = vpop.eup %2273  ;;  %2299 = vrcp.f32 %v804_v14  ;;  %v802_v19 = vadd.f32 1.0, %v2272_v15 }
 0x106   : > { %v2276_v22 = vpop.eup %2275  ;;  %2301 = vrcp.f32 %v794_v16  ;;  %v797_v23 = vadd.f32 1.0, %v2274_v18 }
 0x107   : > { %v2278_v24 = vpop.eup %2277  ;;  %2303 = vrcp.f32 %v802_v19  ;;  %v805_v25 = vadd.f32 1.0, %v2276_v22 }
 0x108   : > { %v2280_v28 = vpop.eup %2279  ;;  %2305 = vrcp.f32 %v797_v23  ;;  %v795_v29 = vadd.f32 1.0, %v2278_v24 }
 0x109   : > { %v2282_v30 = vpop.eup %2281  ;;  %2307 = vrcp.f32 %v805_v25  ;;  %v803_v31 = vadd.f32 1.0, %v2280_v28 }
 0x10a   : > { %v2284_v34 = vpop.eup %2283  ;;  %2309 = vrcp.f32 %v795_v29  ;;  %v800_v35 = vadd.f32 1.0, %v2282_v30 }
 0x10b   : > { %v2286_v36 = vpop.eup %2285  ;;  %2311 = vrcp.f32 %v803_v31  ;;  %v808_v39 = vadd.f32 1.0, %v2284_v34 }
 0x10c   : > { %v2288_v40 = vpop.eup %2287  ;;  %2313 = vrcp.f32 %v800_v35  ;;  %v798_v41 = vadd.f32 1.0, %v2286_v36 }
 0x10d   : > { %v2290_v42 = vpop.eup %2289  ;;  %2315 = vrcp.f32 %v808_v39  ;;  %v806_v43 = vadd.f32 1.0, %v2288_v40 }
 0x10e   : > { %v2292_v46 = vpop.eup %2291  ;;  %2317 = vrcp.f32 %v798_v41  ;;  %v801_v47 = vadd.f32 1.0, %v2290_v42 }
 0x10f   : > { %v2294_v48 = vpop.eup %2293  ;;  %2319 = vrcp.f32 %v806_v43  ;;  %v809_v51 = vadd.f32 1.0, %v2292_v46 }
 0x110   : > { %v2296_v52 = vpop.eup %2295  ;;  %2321 = vrcp.f32 %v801_v47  ;;  %v799_v53 = vadd.f32 1.0, %v2294_v48 }
 0x111   : > { %v2298_v54 = vpop.eup %2297  ;;  %2323 = vrcp.f32 %v809_v51  ;;  %v807_v55 = vadd.f32 1.0, %v2296_v52 }
 0x112   : > { %v2300_v58 = vpop.eup %2299  ;;  %v844_v59 = vmul.f32 %v2298_v54, %v2674_v20  ;;  %2325 = vrcp.f32 %v799_v53 }
 0x113   : > { %v2302_v60 = vpop.eup %2301  ;;  %v852_v63 = vmul.f32 %v2300_v58, %v2677_v21  ;;  %2327 = vrcp.f32 %v807_v55 }
 0x114   : > { %v2304_v0 = vpop.eup %2303  ;;  %861 = vst [vmem:[#allocation2 + $0x48] sm:$0xff] %v844_v59  ;;  %v842_v7 = vmul.f32 %v2302_v60, %v2682_v26 }
 0x115   : > { %v2306_v8 = vpop.eup %2305  ;;  %869 = vst [vmem:[#allocation2 + $0xc8] sm:$0xff] %v852_v63  ;;  %v850_v11 = vmul.f32 %v2304_v0, %v2685_v27 }
 0x116   : > { %v2308_v12 = vpop.eup %2307  ;;  %859 = vst [vmem:[#allocation2 + $0x28] sm:$0xff] %v842_v7  ;;  %v845_v13 = vmul.f32 %v2306_v8, %v2690_v32 }
 0x117   : > { %v2310_v14 = vpop.eup %2309  ;;  %867 = vst [vmem:[#allocation2 + $0xa8] sm:$0xff] %v850_v11  ;;  %v853_v20 = vmul.f32 %v2308_v12, %v2693_v33 }
 0x118   : > { %v2312_v15 = vpop.eup %2311  ;;  %862 = vst [vmem:[#allocation2 + $0x50] sm:$0xff] %v845_v13  ;;  %v843_v21 = vmul.f32 %v2310_v14, %v2697_v37 }
 0x119   : > { %v2314_v16 = vpop.eup %2313  ;;  %870 = vst [vmem:[#allocation2 + $0xd0] sm:$0xff] %v853_v20  ;;  %v851_v26 = vmul.f32 %v2312_v15, %v2700_v38 }
 0x11a   : > { %v2316_v18 = vpop.eup %2315  ;;  %860 = vst [vmem:[#allocation2 + $0x30] sm:$0xff] %v843_v21  ;;  %v848_v27 = vmul.f32 %v2314_v16, %v2706_v44 }
 0x11b   : > { %v2318_v19 = vpop.eup %2317  ;;  %868 = vst [vmem:[#allocation2 + $0xb0] sm:$0xff] %v851_v26  ;;  %v856_v32 = vmul.f32 %v2316_v18, %v2709_v45 }
 0x11c   : > { %v2320_v22 = vpop.eup %2319  ;;  %865 = vst [vmem:[#allocation2 + $0x88] sm:$0xff] %v848_v27  ;;  %v846_v33 = vmul.f32 %v2318_v19, %v2713_v49 }
 0x11d   : > { %v2322_v23 = vpop.eup %2321  ;;  %873 = vst [vmem:[#allocation2 + $0x108] sm:$0xff] %v856_v32  ;;  %v854_v37 = vmul.f32 %v2320_v22, %v2716_v50 }
 0x11e   : > { %v2324_v24 = vpop.eup %2323  ;;  %863 = vst [vmem:[#allocation2 + $0x68] sm:$0xff] %v846_v33  ;;  %v849_v38 = vmul.f32 %v2322_v23, %v2722_v56 }
 0x11f   : > { %v2326_v25 = vpop.eup %2325  ;;  %871 = vst [vmem:[#allocation2 + $0xe8] sm:$0xff] %v854_v37  ;;  %v857_v44 = vmul.f32 %v2324_v24, %v2725_v57  ;;  %878 = sbr.rel (%p1963_p11) target bundleno = 294 (0x126), region = 52 }
 0x120   : > { %v2328_v28 = vpop.eup %2327  ;;  %866 = vst [vmem:[#allocation2 + $0x90] sm:$0xff] %v849_v38  ;;  %v847_v45 = vmul.f32 %v2326_v25, %v2729_v61 }
 0x121   : > { %874 = vst [vmem:[#allocation2 + $0x110] sm:$0xff] %v857_v44  ;;  %v855_v29 = vmul.f32 %v2328_v28, %v2732_v62 }
 0x122   : > { %864 = vst [vmem:[#allocation2 + $0x70] sm:$0xff] %v847_v45 }
 0x123   : > { %872 = vst [vmem:[#allocation2 + $0xf0] sm:$0xff] %v855_v29 }
 0x124   : > { %v2452_v49 = vmov 0.0  }
 0x125   : > { %879 = vst [vmem:[#allocation2 + $0x8] sm:$0xff] %v2452_v49  ;;  %880 = vst [vmem:[#allocation2 + $0x10] sm:$0xff] %v2452_v49 }
 0x126 PF: > { %p1964_p12 = scmp.le.s32.totalorder %s2433_s27, 0 }
 0x128   : > { %884 = sbr.rel (%p1964_p12) target bundleno = 568 (0x238), region = 56 }
 0x12d   : > { %v2453_v50 = vmov 0.0   ;;  %vm2454_vm0 = vmmov 0   ;;  %v2329_v56 = vld [vmem:[%s2606_s17] sm:$0xff]  }
 0x12e   : > { %2146 = vmatprep.subr.bf16.mxu0 %v2453_v50  ;;  %2162 = vmatprep.mubr.msk.bf16.mxu0 %vm2454_vm0, %v2453_v50 }
 0x12f   : > { %2147 = vmatpush3.bf16.msra.mxu0 %v2542_v1 }
 0x130   : > { %2148 = vmatprep.subr.bf16.mxu0 %v2453_v50 }
 0x133   : > { %2149 = vmatpush3.bf16.msra.mxu0 %v2550_v2 }
 0x134   : > { %2150 = vmatprep.subr.bf16.mxu0 %v2453_v50 }
 0x137   : > { %2151 = vmatpush3.bf16.msra.mxu0 %v2564_v3 }
 0x138   : > { %2152 = vmatprep.subr.bf16.mxu0 %v2453_v50 }
 0x13b   : > { %2153 = vmatpush3.bf16.msra.mxu0 %v2579_v4 }
 0x13c   : > { %2154 = vmatprep.subr.bf16.mxu0 %v2453_v50 }
 0x13f   : > { %2155 = vmatpush3.bf16.msra.mxu0 %v2593_v5 }
 0x140   : > { %2156 = vmatprep.subr.bf16.mxu0 %v2453_v50 }
 0x143   : > { %2157 = vmatpush3.bf16.msra.mxu0 %v2613_v6 }
 0x144   : > { %2158 = vmatprep.subr.bf16.mxu0 %v2453_v50 }
 0x147   : > { %2159 = vmatpush3.bf16.msra.mxu0 %v2638_v9 }
 0x148   : > { %2160 = vmatprep.subr.bf16.mxu0 %v2453_v50 }
 0x14b   : > { %2161 = vmatpush3.bf16.msra.mxu0 %v2650_v10 }
 0x14e   : > { %2163 = vmatmul.mubr.bf16.vlgmr.msra.gmra.mxu0 %v2329_v56 }
 0x20e   : > { %v927_v57 = vpop.f32.mrf.mxu0 }
 0x20f   : > { %v928_v61 = vadd.f32 %v2671_v17, %v927_v57 }
 0x210   : > { %v2164_v62 = vpop.f32.mrf.mxu0 }
 0x211   : > { %v1966_v30 = vmul.f32 -1.442695, %v928_v61 }
 0x212   : > { %v930_v31 = vpop.f32.mrf.mxu0 }
 0x213   : > { %2330 = vpow2.f32 %v1966_v30  ;;  %v931_v34 = vadd.f32 %v2671_v17, %v930_v31 }
 0x214   : > { %v2165_v35 = vpop.f32.mrf.mxu0 }
 0x215   : > { %v1967_v36 = vmul.f32 -1.442695, %v931_v34 }
 0x217   : > { %2332 = vpow2.f32 %v1967_v36 }
 0x220   : > { %v2331_v39 = vpop.eup %2330 }
 0x221   : > { %v940_v40 = vadd.f32 1.0, %v2331_v39 }
 0x223   : > { %2334 = vrcp.f32 %v940_v40 }
 0x224   : > { %v2333_v41 = vpop.eup %2332 }
 0x225   : > { %v941_v42 = vadd.f32 1.0, %v2333_v41 }
 0x227   : > { %2336 = vrcp.f32 %v941_v42 }
 0x230   : > { %v2335_v43 = vpop.eup %2334 }
 0x231   : > { %v946_v46 = vmul.f32 %v2335_v43, %v928_v61 }
 0x233   : > { %948 = vst [vmem:[#allocation2 + $0x8] sm:$0xff] %v946_v46 }
 0x234   : > { %v2337_v47 = vpop.eup %2336 }
 0x235   : > { %v947_v48 = vmul.f32 %v2337_v47, %v931_v34 }
 0x237   : > { %949 = vst [vmem:[#allocation2 + $0x10] sm:$0xff] %v947_v48 }
 0x238 PF: > { %p1968_p13 = scmp.ne.s32.totalorder %s2433_s27, 1 }
 0x23a   : > { %953 = sbr.rel (%p1968_p13) target bundleno = 577 (0x241), region = 60 }
 0x23f   : > { %v2455_v51 = vmov 0.0  }
 0x240   : > { %955 = vst [vmem:[#allocation2 + $0x128] sm:$0xff] %v2455_v51  ;;  %956 = vst [vmem:[#allocation2 + $0x130] sm:$0xff] %v2455_v51 }
 0x241 PF: > { %p1969_p0 = scmp.ge.s32.totalorder %s2433_s27, 1 }
 0x243   : > { %960 = sbr.rel (%p1969_p0) target bundleno = 851 (0x353), region = 64 }
 0x248   : > { %v2456_v52 = vmov 0.0   ;;  %vm2457_vm1 = vmmov 0  }
 0x249   : > { %2166 = vmatprep.subr.bf16.mxu0 %v2456_v52  ;;  %2182 = vmatprep.mubr.msk.bf16.mxu0 %vm2457_vm1, %v2456_v52 }
 0x24a   : > { %2167 = vmatpush3.bf16.msra.mxu0 %v2542_v1  ;;  %v2338_v1 = vld [vmem:[%s470_s16] sm:$0xff]  }
 0x24b   : > { %2168 = vmatprep.subr.bf16.mxu0 %v2456_v52 }
 0x24e   : > { %2169 = vmatpush3.bf16.msra.mxu0 %v2550_v2 }
 0x24f   : > { %2170 = vmatprep.subr.bf16.mxu0 %v2456_v52 }
 0x252   : > { %2171 = vmatpush3.bf16.msra.mxu0 %v2564_v3 }
 0x253   : > { %2172 = vmatprep.subr.bf16.mxu0 %v2456_v52 }
 0x256   : > { %2173 = vmatpush3.bf16.msra.mxu0 %v2579_v4 }
 0x257   : > { %2174 = vmatprep.subr.bf16.mxu0 %v2456_v52 }
 0x25a   : > { %2175 = vmatpush3.bf16.msra.mxu0 %v2593_v5 }
 0x25b   : > { %2176 = vmatprep.subr.bf16.mxu0 %v2456_v52 }
 0x25e   : > { %2177 = vmatpush3.bf16.msra.mxu0 %v2613_v6 }
 0x25f   : > { %2178 = vmatprep.subr.bf16.mxu0 %v2456_v52 }
 0x262   : > { %2179 = vmatpush3.bf16.msra.mxu0 %v2638_v9 }
 0x263   : > { %2180 = vmatprep.subr.bf16.mxu0 %v2456_v52 }
 0x266   : > { %2181 = vmatpush3.bf16.msra.mxu0 %v2650_v10 }
 0x269   : > { %2183 = vmatmul.mubr.bf16.vlgmr.msra.gmra.mxu0 %v2338_v1 }
 0x329   : > { %v1003_v2 = vpop.f32.mrf.mxu0 }
 0x32a   : > { %v1004_v3 = vadd.f32 %v2671_v17, %v1003_v2 }
 0x32b   : > { %v2184_v4 = vpop.f32.mrf.mxu0 }
 0x32c   : > { %v1971_v5 = vmul.f32 -1.442695, %v1004_v3 }
 0x32d   : > { %v1006_v53 = vpop.f32.mrf.mxu0 }
 0x32e   : > { %2339 = vpow2.f32 %v1971_v5  ;;  %v1007_v6 = vadd.f32 %v2671_v17, %v1006_v53 }
 0x32f   : > { %v2185_v54 = vpop.f32.mrf.mxu0 }
 0x330   : > { %v1972_v9 = vmul.f32 -1.442695, %v1007_v6 }
 0x332   : > { %2341 = vpow2.f32 %v1972_v9 }
 0x33b   : > { %v2340_v55 = vpop.eup %2339 }
 0x33c   : > { %v1016_v58 = vadd.f32 1.0, %v2340_v55 }
 0x33e   : > { %2343 = vrcp.f32 %v1016_v58 }
 0x33f   : > { %v2342_v59 = vpop.eup %2341 }
 0x340   : > { %v1017_v60 = vadd.f32 1.0, %v2342_v59 }
 0x342   : > { %2345 = vrcp.f32 %v1017_v60 }
 0x34b   : > { %v2344_v10 = vpop.eup %2343 }
 0x34c   : > { %v1022_v63 = vmul.f32 %v2344_v10, %v1004_v3 }
 0x34e   : > { %1025 = vst [vmem:[#allocation2 + $0x128] sm:$0xff] %v1022_v63 }
 0x34f   : > { %v2346_v0 = vpop.eup %2345 }
 0x350   : > { %v1023_v7 = vmul.f32 %v2346_v0, %v1007_v6 }
 0x352   : > { %1026 = vst [vmem:[#allocation2 + $0x130] sm:$0xff] %v1023_v7 }
 0x353 PF: > { %v1046_v8 = vlaneseq  ;;  %v1027_v17 = vld [vmem:[%s3260_s5] sm:$0xff]  ;;  %v1031_v13 = vld [vmem:[#allocation2 + $0xf] sm:$0xff]  ;;  %v2803_v57 = vld [vmem:[%s3260_s5 + $0x8] ss:$0 sm:$0xff]  ;;  %s3265_s15 = scalar_lea.vmem %s3263_s8, %s3277_s13 }
 0x354   : > { %v1030_v12 = vld [vmem:[#allocation2 + $0x7] sm:$0xff]  ;;  %v1067_v26 = vld [vmem:[#allocation2 + $0x10] sm:$0xff] }
 0x355   : > { %v1047_v11 = vshrl.u32 %v1046_v8, 7  ;;  %v1066_v16 = vld [vmem:[#allocation2 + $0x8] sm:$0xff]  ;;  %v1103_v23 = vld [vmem:[#allocation2 + $0x11] sm:$0xff] }
 0x356   : > { %v1102_v18 = vld [vmem:[#allocation2 + $0x9] sm:$0xff]  ;;  %v1259_v29 = vld [vmem:[#allocation2 + $0x31] sm:$0xff] }
 0x357   : > { %v1048_v14 = vsub.s32 0, %v1047_v11  ;;  %v1084_v20 = vsub.s32 1, %v1047_v11  ;;  %v1120_v15 = vsub.s32 2, %v1047_v11  ;;  %v1172_v21 = vsub.s32 3, %v1047_v11  ;;  %v1154_v24 = vld [vmem:[#allocation2 + $0x27] sm:$0xff]  ;;  %v1155_v38 = vld [vmem:[#allocation2 + $0x2f] sm:$0xff] }
 0x358   : > { %v1224_v27 = vsub.s32 4, %v1047_v11  ;;  %v1276_v19 = vsub.s32 5, %v1047_v11  ;;  %v1329_v32 = vsub.s32 6, %v1047_v11  ;;  %v1206_v44 = vld [vmem:[#allocation2 + $0x28] sm:$0xff]  ;;  %v1207_v28 = vld [vmem:[#allocation2 + $0x30] sm:$0xff]  ;;  %v1381_v56 = vsub.s32 7, %v1047_v11 }
 0x359   : > { %v2786_v22 = vrot.slane %v1027_v17, %v1048_v14  ;;  %v2788_v33 = vrot.slane %v1027_v17, %v1084_v20  ;;  %v2790_v37 = vrot.slane %v1027_v17, %v1120_v15  ;;  %v2792_v25 = vrot.slane %v1027_v17, %v1172_v21  ;;  %v1258_v34 = vld [vmem:[#allocation2 + $0x29] sm:$0xff]  ;;  %v2825_v5 = vld [vmem:[#allocation2 + $0x51] sm:$0xff] }
 0x35a   : > { %v2794_v45 = vrot.slane %v1027_v17, %v1224_v27  ;;  %v2796_v49 = vrot.slane %v1027_v17, %v1276_v19  ;;  %v2798_v50 = vrot.slane %v1027_v17, %v1329_v32  ;;  %v2813_v41 = vld [vmem:[#allocation2 + $0x47] sm:$0xff]  ;;  %v2815_v42 = vld [vmem:[#allocation2 + $0x4f] sm:$0xff]  ;;  %v2831_v54 = vrot.slane %v1027_v17, %v1381_v56  ;;  %v2851_v19 = vld [vmem:[%s3261_s6] ss:$0 sm:$0xff] }
 0x35b   : > { %v1050_v61 = vmul.f32 %v2786_v22, %v1030_v12  ;;  %v1051_v62 = vmul.f32 %v2786_v22, %v1031_v13  ;;  %v1086_v30 = vmul.f32 %v2788_v33, %v1066_v16  ;;  %v1087_v31 = vmul.f32 %v2788_v33, %v1067_v26  ;;  %v2817_v43 = vld [vmem:[#allocation2 + $0x49] sm:$0xff] }
 0x35c   : > { %v1122_v35 = vmul.f32 %v2790_v37, %v1102_v18  ;;  %v1123_v36 = vmul.f32 %v2790_v37, %v1103_v23  ;;  %v1174_v39 = vmul.f32 %v2792_v25, %v1154_v24  ;;  %v1175_v40 = vmul.f32 %v2792_v25, %v1155_v38  ;;  %v2823_v4 = vld [vmem:[#allocation2 + $0x50] sm:$0xff]  ;;  %v1363_v10 = vld [vmem:[#allocation2 + $0x48] sm:$0xff] }
 0x35d   : > { %v1226_v46 = vmul.f32 %v2794_v45, %v1206_v44  ;;  %v1227_v47 = vmul.f32 %v2794_v45, %v1207_v28  ;;  %v1278_v48 = vmul.f32 %v2796_v49, %v1258_v34  ;;  %v1279_v51 = vmul.f32 %v2796_v49, %v1259_v29 }
 0x35e   : > { %v1138_v52 = vadd.f32 %v1122_v35, %v1050_v61  ;;  %v1139_v1 = vadd.f32 %v1123_v36, %v1051_v62  ;;  %v1190_v2 = vadd.f32 %v1174_v39, %v1086_v30  ;;  %v1191_v3 = vadd.f32 %v1175_v40, %v1087_v31  ;;  %v2860_v62 = vld [vmem:[#allocation2 + $0x6f] sm:$0xff] }
 0x35f   : > { %v1331_v53 = vmul.f32 %v2798_v50, %v2813_v41  ;;  %v1332_v6 = vmul.f32 %v2798_v50, %v2815_v42  ;;  %v1435_v9 = vmul.f32 %v2803_v57, %v2817_v43  ;;  %v1383_v63 = vmul.f32 %v2831_v54, %v1363_v10  ;;  %v2862_v30 = vld [vmem:[#allocation2 + $0x68] sm:$0xff]  ;;  %v2868_v39 = vld [vmem:[#allocation2 + $0x70] sm:$0xff] }
 0x360   : > { %v1242_v55 = vadd.f32 %v1226_v46, %v1138_v52  ;;  %v1243_v58 = vadd.f32 %v1227_v47, %v1139_v1  ;;  %v1294_v59 = vadd.f32 %v1278_v48, %v1190_v2  ;;  %v1295_v60 = vadd.f32 %v1279_v51, %v1191_v3  ;;  %v2878_v51 = vld [vmem:[#allocation2 + $0x69] sm:$0xff]  ;;  %v2880_v52 = vld [vmem:[#allocation2 + $0x71] sm:$0xff] }
 0x361   : > { %v1384_v0 = vmul.f32 %v2831_v54, %v2823_v4  ;;  %v1436_v7 = vmul.f32 %v2803_v57, %v2825_v5  ;;  %v1052_v8 = vmul.f32 %v1154_v24, %v2786_v22  ;;  %v1053_v12 = vmul.f32 %v1155_v38, %v2786_v22 }
 0x362   : > { %v1347_v11 = vadd.f32 %v1331_v53, %v1242_v55  ;;  %v1348_v17 = vadd.f32 %v1332_v6, %v1243_v58  ;;  %v1088_v13 = vmul.f32 %v1206_v44, %v2788_v33  ;;  %v1399_v14 = vadd.f32 %v1383_v63, %v1294_v59  ;;  %v2858_v44 = vld [vmem:[#allocation2 + $0x67] sm:$0xff] }
 0x363   : > { %v1400_v20 = vadd.f32 %v1384_v0, %v1295_v60  ;;  %v1089_v15 = vmul.f32 %v1207_v28, %v2788_v33  ;;  %v1124_v21 = vmul.f32 %v1258_v34, %v2790_v37  ;;  %v1125_v18 = vmul.f32 %v1259_v29, %v2790_v37 }
 0x364   : > { %v1451_v16 = vadd.f32 %v1435_v9, %v1347_v11  ;;  %v1452_v26 = vadd.f32 %v1436_v7, %v1348_v17  ;;  %v1176_v27 = vmul.f32 %v2813_v41, %v2792_v25  ;;  %v1177_v23 = vmul.f32 %v2815_v42, %v2792_v25 }
 0x365   : > { %v1140_v32 = vadd.f32 %v1124_v21, %v1052_v8  ;;  %v1228_v24 = vmul.f32 %v1363_v10, %v2794_v45  ;;  %v1229_v38 = vmul.f32 %v2823_v4, %v2794_v45  ;;  %v1141_v56 = vadd.f32 %v1125_v18, %v1053_v12 }
 0x366   : > { %v1467_v28 = vadd.f32 %v1451_v16, %v1399_v14  ;;  %v1468_v29 = vadd.f32 %v1452_v26, %v1400_v20  ;;  %v1192_v61 = vadd.f32 %v1176_v27, %v1088_v13  ;;  %v1193_v31 = vadd.f32 %v1177_v23, %v1089_v15  ;;  %v2911_v26 = vld [vmem:[#allocation2 + $0x87] sm:$0xff] }
 0x367   : > { %v1244_v34 = vadd.f32 %v1228_v24, %v1140_v32  ;;  %v1280_v35 = vmul.f32 %v2817_v43, %v2796_v49  ;;  %v1281_v36 = vmul.f32 %v2825_v5, %v2796_v49  ;;  %v1245_v47 = vadd.f32 %v1229_v38, %v1141_v56 }
 0x368   : > { %v2871_v40 = vadd.f32 %v2851_v19, %v1467_v28  ;;  %v2874_v46 = vadd.f32 %v2851_v19, %v1468_v29  ;;  %v1333_v48 = vmul.f32 %v2798_v50, %v2858_v44  ;;  %v1334_v3 = vmul.f32 %v2798_v50, %v2860_v62  ;;  %v2925_v28 = vld [vmem:[#allocation2 + $0x88] sm:$0xff]  ;;  %v2927_v29 = vld [vmem:[#allocation2 + $0x90] sm:$0xff] }
 0x369   : > { %v1296_v1 = vadd.f32 %v1280_v35, %v1192_v61  ;;  %v1297_v2 = vadd.f32 %v1281_v36, %v1193_v31  ;;  %v1385_v53 = vmul.f32 %v2831_v54, %v2862_v30  ;;  %v1386_v58 = vmul.f32 %v2831_v54, %v2868_v39  ;;  %v2933_v35 = vld [vmem:[#allocation2 + $0x89] sm:$0xff]  ;;  %v2935_v36 = vld [vmem:[#allocation2 + $0x91] sm:$0xff] }
 0x36a   : > { %v1975_v6 = vmul.f32 -1.442695, %v2871_v40  ;;  %v1976_v9 = vmul.f32 -1.442695, %v2874_v46  ;;  %v1349_v55 = vadd.f32 %v1333_v48, %v1244_v34  ;;  %v1350_v59 = vadd.f32 %v1334_v3, %v1245_v47 }
 0x36b   : > { %v1401_v60 = vadd.f32 %v1385_v53, %v1296_v1  ;;  %v1437_v63 = vmul.f32 %v2803_v57, %v2878_v51  ;;  %v1438_v0 = vmul.f32 %v2803_v57, %v2880_v52  ;;  %v1402_v7 = vadd.f32 %v1386_v58, %v1297_v2 }
 0x36c   : > { %2347 = vpow2.f32 %v1975_v6  ;;  %v1054_v8 = vmul.f32 %v2813_v41, %v2786_v22  ;;  %v1055_v11 = vmul.f32 %v2815_v42, %v2786_v22  ;;  %v1090_v13 = vmul.f32 %v1363_v10, %v2788_v33 }
 0x36d   : > { %2349 = vpow2.f32 %v1976_v9  ;;  %v1453_v17 = vadd.f32 %v1437_v63, %v1349_v55  ;;  %v1454_v12 = vadd.f32 %v1438_v0, %v1350_v59  ;;  %v1091_v14 = vmul.f32 %v2823_v4, %v2788_v33 }
 0x36e   : > { %v1126_v20 = vmul.f32 %v2817_v43, %v2790_v37  ;;  %v1127_v15 = vmul.f32 %v2825_v5, %v2790_v37  ;;  %v1178_v41 = vmul.f32 %v2858_v44, %v2792_v25  ;;  %v1179_v42 = vmul.f32 %v2860_v62, %v2792_v25  ;;  %v2915_v5 = vld [vmem:[#allocation2 + $0x8f] sm:$0xff] }
 0x36f   : > { %v1469_v21 = vadd.f32 %v1453_v17, %v1401_v60  ;;  %v1470_v16 = vadd.f32 %v1454_v12, %v1402_v7  ;;  %v1230_v10 = vmul.f32 %v2862_v30, %v2794_v45  ;;  %v1231_v43 = vmul.f32 %v2868_v39, %v2794_v45 }
 0x370   : > { %v1142_v4 = vadd.f32 %v1126_v20, %v1054_v8  ;;  %v1143_v18 = vadd.f32 %v1127_v15, %v1055_v11  ;;  %v1194_v27 = vadd.f32 %v1178_v41, %v1090_v13  ;;  %v1195_v24 = vadd.f32 %v1179_v42, %v1091_v14 }
 0x371   : > { %v2918_v32 = vadd.f32 %v2851_v19, %v1469_v21  ;;  %v2921_v23 = vadd.f32 %v2851_v19, %v1470_v16  ;;  %v1282_v38 = vmul.f32 %v2878_v51, %v2796_v49  ;;  %v1283_v31 = vmul.f32 %v2880_v52, %v2796_v49 }
 0x372   : > { %v1246_v56 = vadd.f32 %v1230_v10, %v1142_v4  ;;  %v1247_v61 = vadd.f32 %v1231_v43, %v1143_v18  ;;  %v1335_v34 = vmul.f32 %v2798_v50, %v2911_v26  ;;  %v1336_v2 = vmul.f32 %v2798_v50, %v2915_v5  ;;  %v2975_v43 = vld [vmem:[#allocation2 + $0xaf] sm:$0xff] }
 0x373   : > { %v1977_v47 = vmul.f32 -1.442695, %v2918_v32  ;;  %v1978_v48 = vmul.f32 -1.442695, %v2921_v23  ;;  %v1298_v1 = vadd.f32 %v1282_v38, %v1194_v27  ;;  %v1299_v3 = vadd.f32 %v1283_v31, %v1195_v24  ;;  %v2973_v27 = vld [vmem:[#allocation2 + $0xa7] sm:$0xff]  ;;  %v2983_v31 = vld [vmem:[#allocation2 + $0xb0] sm:$0xff] }
 0x374   : > { %v1351_v53 = vadd.f32 %v1335_v34, %v1246_v56  ;;  %v1387_v6 = vmul.f32 %v2831_v54, %v2925_v28  ;;  %v1388_v9 = vmul.f32 %v2831_v54, %v2927_v29  ;;  %v1352_v55 = vadd.f32 %v1336_v2, %v1247_v61  ;;  %v2981_v61 = vld [vmem:[#allocation2 + $0xa8] sm:$0xff] }
 0x375   : > { %2351 = vpow2.f32 %v1977_v47  ;;  %v1439_v58 = vmul.f32 %v2803_v57, %v2933_v35  ;;  %v1440_v59 = vmul.f32 %v2803_v57, %v2935_v36  ;;  %v1056_v0 = vmul.f32 %v2858_v44, %v2786_v22 }
 0x376   : > { %2353 = vpow2.f32 %v1978_v48  ;;  %v1403_v60 = vadd.f32 %v1387_v6, %v1298_v1  ;;  %v1404_v63 = vadd.f32 %v1388_v9, %v1299_v3  ;;  %v1057_v11 = vmul.f32 %v2860_v62, %v2786_v22  ;;  %v2989_v1 = vld [vmem:[#allocation2 + $0xa9] sm:$0xff]  ;;  %v2995_v9 = vld [vmem:[#allocation2 + $0xb1] sm:$0xff] }
 0x377   : > { %v1455_v7 = vadd.f32 %v1439_v58, %v1351_v53  ;;  %v1456_v8 = vadd.f32 %v1440_v59, %v1352_v55  ;;  %v1092_v17 = vmul.f32 %v2862_v30, %v2788_v33  ;;  %v1093_v12 = vmul.f32 %v2868_v39, %v2788_v33 }
 0x378   : > { %v1128_v13 = vmul.f32 %v2878_v51, %v2790_v37  ;;  %v1129_v14 = vmul.f32 %v2880_v52, %v2790_v37  ;;  %v1180_v44 = vmul.f32 %v2911_v26, %v2792_v25  ;;  %v1181_v62 = vmul.f32 %v2915_v5, %v2792_v25 }
 0x379   : > { %v2348_v20 = vpop.eup %2347  ;;  %v1471_v15 = vadd.f32 %v1455_v7, %v1403_v60  ;;  %v1472_v41 = vadd.f32 %v1456_v8, %v1404_v63  ;;  %v1232_v30 = vmul.f32 %v2925_v28, %v2794_v45  ;;  %v1233_v24 = vmul.f32 %v2927_v29, %v2794_v45 }
 0x37a   : > { %v2350_v21 = vpop.eup %2349  ;;  %v1553_v39 = vadd.f32 1.0, %v2348_v20  ;;  %v1144_v16 = vadd.f32 %v1128_v13, %v1056_v0  ;;  %v1145_v42 = vadd.f32 %v1129_v14, %v1057_v11  ;;  %v1196_v51 = vadd.f32 %v1180_v44, %v1092_v17 }
 0x37b   : > { %v1554_v10 = vadd.f32 1.0, %v2350_v21  ;;  %v2968_v52 = vadd.f32 %v2851_v19, %v1471_v15  ;;  %v2971_v4 = vadd.f32 %v2851_v19, %v1472_v41  ;;  %v1197_v18 = vadd.f32 %v1181_v62, %v1093_v12 }
 0x37c   : > { %2355 = vrcp.f32 %v1553_v39  ;;  %v1248_v38 = vadd.f32 %v1232_v30, %v1144_v16  ;;  %v1284_v56 = vmul.f32 %v2933_v35, %v2796_v49  ;;  %v1285_v48 = vmul.f32 %v2935_v36, %v2796_v49 }
 0x37d   : > { %2357 = vrcp.f32 %v1554_v10  ;;  %v1979_v34 = vmul.f32 -1.442695, %v2968_v52  ;;  %v1980_v47 = vmul.f32 -1.442695, %v2971_v4  ;;  %v1249_v2 = vadd.f32 %v1233_v24, %v1145_v42  ;;  %v3023_v10 = vld [vmem:[#allocation2 + $0xcf] sm:$0xff] }
 0x37e   : > { %v1300_v3 = vadd.f32 %v1284_v56, %v1196_v51  ;;  %v1337_v53 = vmul.f32 %v2798_v50, %v2973_v27  ;;  %v1338_v6 = vmul.f32 %v2798_v50, %v2975_v43  ;;  %v1301_v55 = vadd.f32 %v1285_v48, %v1197_v18  ;;  %v3021_v51 = vld [vmem:[#allocation2 + $0xc7] sm:$0xff] }
 0x37f   : > { %2359 = vpow2.f32 %v1979_v34  ;;  %v1389_v58 = vmul.f32 %v2831_v54, %v2981_v61  ;;  %v1390_v59 = vmul.f32 %v2831_v54, %v2983_v31  ;;  %v1441_v0 = vmul.f32 %v2803_v57, %v2989_v1 }
 0x380   : > { %2361 = vpow2.f32 %v1980_v47  ;;  %v1353_v60 = vadd.f32 %v1337_v53, %v1248_v38  ;;  %v1354_v63 = vadd.f32 %v1338_v6, %v1249_v2  ;;  %v1442_v11 = vmul.f32 %v2803_v57, %v2995_v9  ;;  %v3037_v47 = vld [vmem:[#allocation2 + $0xc8] sm:$0xff] }
 0x381   : > { %v1405_v7 = vadd.f32 %v1389_v58, %v1300_v3  ;;  %v1406_v8 = vadd.f32 %v1390_v59, %v1301_v55  ;;  %v1058_v17 = vmul.f32 %v2911_v26, %v2786_v22  ;;  %v1059_v14 = vmul.f32 %v2915_v5, %v2786_v22 }
 0x382   : > { %v2352_v12 = vpop.eup %2351  ;;  %v1457_v13 = vadd.f32 %v1441_v0, %v1353_v60  ;;  %v1094_v44 = vmul.f32 %v2925_v28, %v2788_v33  ;;  %v1095_v20 = vmul.f32 %v2927_v29, %v2788_v33  ;;  %v1458_v62 = vadd.f32 %v1442_v11, %v1354_v63  ;;  %v3047_v63 = vld [vmem:[#allocation2 + $0xd0] sm:$0xff] }
 0x383   : > { %v2354_v15 = vpop.eup %2353  ;;  %v1555_v41 = vadd.f32 1.0, %v2352_v12  ;;  %v1130_v30 = vmul.f32 %v2933_v35, %v2790_v37  ;;  %v1131_v26 = vmul.f32 %v2935_v36, %v2790_v37  ;;  %v1182_v5 = vmul.f32 %v2973_v27, %v2792_v25  ;;  %v3049_v0 = vld [vmem:[#allocation2 + $0xc9] sm:$0xff] }
 0x384   : > { %v1556_v21 = vadd.f32 1.0, %v2354_v15  ;;  %v1473_v39 = vadd.f32 %v1457_v13, %v1405_v7  ;;  %v1183_v28 = vmul.f32 %v2975_v43, %v2792_v25  ;;  %v1474_v16 = vadd.f32 %v1458_v62, %v1406_v8  ;;  %v3051_v7 = vld [vmem:[#allocation2 + $0xd1] sm:$0xff] }
 0x385   : > { %2363 = vrcp.f32 %v1555_v41  ;;  %v1146_v29 = vadd.f32 %v1130_v30, %v1058_v17  ;;  %v1147_v42 = vadd.f32 %v1131_v26, %v1059_v14  ;;  %v1198_v36 = vadd.f32 %v1182_v5, %v1094_v44 }
 0x386   : > { %2365 = vrcp.f32 %v1556_v21  ;;  %v3026_v35 = vadd.f32 %v2851_v19, %v1473_v39  ;;  %v1199_v18 = vadd.f32 %v1183_v28, %v1095_v20  ;;  %v3029_v24 = vadd.f32 %v2851_v19, %v1474_v16 }
 0x387   : > { %v1234_v38 = vmul.f32 %v2981_v61, %v2794_v45  ;;  %v1235_v56 = vmul.f32 %v2983_v31, %v2794_v45  ;;  %v1286_v34 = vmul.f32 %v2989_v1, %v2796_v49  ;;  %v1287_v2 = vmul.f32 %v2995_v9, %v2796_v49 }
 0x388   : > { %v1981_v48 = vmul.f32 -1.442695, %v3026_v35  ;;  %v1339_v3 = vmul.f32 %v2798_v50, %v3021_v51  ;;  %v1340_v53 = vmul.f32 %v2798_v50, %v3023_v10  ;;  %v1982_v55 = vmul.f32 -1.442695, %v3029_v24 }
 0x389   : > { %v2356_v6 = vpop.eup %2355  ;;  %v1250_v58 = vadd.f32 %v1234_v38, %v1146_v29  ;;  %v1251_v59 = vadd.f32 %v1235_v56, %v1147_v42  ;;  %v1302_v60 = vadd.f32 %v1286_v34, %v1198_v36  ;;  %v1303_v17 = vadd.f32 %v1287_v2, %v1199_v18 }
 0x38a   : > { %v2358_v8 = vpop.eup %2357  ;;  %v1601_v11 = vmul.f32 %v2356_v6, %v2871_v40  ;;  %2367 = vpow2.f32 %v1981_v48  ;;  %v1391_v12 = vmul.f32 %v2831_v54, %v3037_v47  ;;  %v1392_v15 = vmul.f32 %v2831_v54, %v3047_v63 }
 0x38b   : > { %v1602_v13 = vmul.f32 %v2358_v8, %v2874_v46  ;;  %2369 = vpow2.f32 %v1982_v55  ;;  %v1355_v14 = vadd.f32 %v1339_v3, %v1250_v58  ;;  %v1356_v44 = vadd.f32 %v1340_v53, %v1251_v59  ;;  %v3093_v59 = vld [vmem:[#allocation2 + $0xe7] sm:$0xff] }
 0x38c   : > { %v2360_v20 = vpop.eup %2359  ;;  %v1407_v41 = vadd.f32 %v1391_v12, %v1302_v60  ;;  %v1443_v62 = vmul.f32 %v2803_v57, %v3049_v0  ;;  %v1444_v40 = vmul.f32 %v2803_v57, %v3051_v7  ;;  %v1060_v46 = vmul.f32 %v2973_v27, %v2786_v22  ;;  %v3095_v60 = vld [vmem:[#allocation2 + $0xef] sm:$0xff] }
 0x38d   : > { %v2362_v30 = vpop.eup %2361  ;;  %v2036_v26 = vpack.c.bf16 %v1602_v13, %v1601_v11  ;;  %v1557_v21 = vadd.f32 1.0, %v2360_v20  ;;  %v1408_v5 = vadd.f32 %v1392_v15, %v1303_v17  ;;  %v1061_v29 = vmul.f32 %v2975_v43, %v2786_v22  ;;  %v3106_v15 = vld [vmem:[#allocation2 + $0xe8] sm:$0xff] }
 0x38e   : > { %v1558_v39 = vadd.f32 1.0, %v2362_v30  ;;  %v1459_v28 = vadd.f32 %v1443_v62, %v1355_v14  ;;  %v1460_v16 = vadd.f32 %v1444_v40, %v1356_v44  ;;  %v1096_v42 = vmul.f32 %v2981_v61, %v2788_v33  ;;  %v3114_v40 = vld [vmem:[#allocation2 + $0xf0] sm:$0xff] }
 0x38f   : > { %2037 = vst [vmem:[%s2623_s22] sm:$0xff] %v2036_v26   ;;  %2371 = vrcp.f32 %v1557_v21  ;;  %v1097_v36 = vmul.f32 %v2983_v31, %v2788_v33  ;;  %v1132_v27 = vmul.f32 %v2989_v1, %v2790_v37  ;;  %v1133_v56 = vmul.f32 %v2995_v9, %v2790_v37  ;;  %v3116_v30 = vld [vmem:[#allocation2 + $0xe9] sm:$0xff]  ;;  %v3118_v26 = vld [vmem:[#allocation2 + $0xf1] sm:$0xff] }
 0x390   : > { %2373 = vrcp.f32 %v1558_v39  ;;  %v1475_v18 = vadd.f32 %v1459_v28, %v1407_v41  ;;  %v1476_v38 = vadd.f32 %v1460_v16, %v1408_v5  ;;  %v1184_v34 = vmul.f32 %v3021_v51, %v2792_v25 }
 0x391   : > { %v1185_v43 = vmul.f32 %v3023_v10, %v2792_v25  ;;  %v1236_v61 = vmul.f32 %v3037_v47, %v2794_v45  ;;  %v1148_v1 = vadd.f32 %v1132_v27, %v1060_v46  ;;  %v1237_v9 = vmul.f32 %v3047_v63, %v2794_v45 }
 0x392   : > { %v2364_v48 = vpop.eup %2363  ;;  %v3083_v31 = vadd.f32 %v2851_v19, %v1475_v18  ;;  %v3086_v2 = vadd.f32 %v2851_v19, %v1476_v38  ;;  %v1149_v6 = vadd.f32 %v1133_v56, %v1061_v29  ;;  %v1200_v55 = vadd.f32 %v1184_v34, %v1096_v42 }
 0x393   : > { %v2366_v3 = vpop.eup %2365  ;;  %v3091_v53 = vmul.f32 %v2364_v48, %v2918_v32  ;;  %v1201_v58 = vadd.f32 %v1185_v43, %v1097_v36  ;;  %v1252_v14 = vadd.f32 %v1236_v61, %v1148_v1  ;;  %v1288_v32 = vmul.f32 %v3049_v0, %v2796_v49 }
 0x394   : > { %v3098_v8 = vmul.f32 %v2366_v3, %v2921_v23  ;;  %v1983_v17 = vmul.f32 -1.442695, %v3083_v31  ;;  %v1984_v12 = vmul.f32 -1.442695, %v3086_v2  ;;  %v1253_v44 = vadd.f32 %v1237_v9, %v1149_v6 }
 0x395   : > { %v1289_v20 = vmul.f32 %v3051_v7, %v2796_v49  ;;  %v1341_v23 = vmul.f32 %v2798_v50, %v3093_v59  ;;  %v1342_v62 = vmul.f32 %v2798_v50, %v3095_v60  ;;  %v1697_v46 = vadd.f32 %v1602_v13, %v1601_v11 }
 0x396   : > { %v2041_v41 = vpack.c.bf16 %v3098_v8, %v3091_v53  ;;  %2375 = vpow2.f32 %v1983_v17  ;;  %v1304_v39 = vadd.f32 %v1288_v32, %v1200_v55  ;;  %v1393_v36 = vmul.f32 %v2831_v54, %v3106_v15  ;;  %v1323_v32 = vld [vmem:[#allocation2 + $0x107] sm:$0xff] }
 0x397   : > { %v2368_v21 = vpop.eup %2367  ;;  %2377 = vpow2.f32 %v1984_v12  ;;  %v1305_v5 = vadd.f32 %v1289_v20, %v1201_v58  ;;  %v1357_v29 = vadd.f32 %v1341_v23, %v1252_v14  ;;  %v1358_v42 = vadd.f32 %v1342_v62, %v1253_v44  ;;  %v1324_v62 = vld [vmem:[#allocation2 + $0x10f] sm:$0xff] }
 0x398   : > { %v2370_v28 = vpop.eup %2369  ;;  %2073 = vst [vmem:[%s2623_s22 + $0x8] sm:$0xff] %v2041_v41   ;;  %v1559_v16 = vadd.f32 1.0, %v2368_v21  ;;  %v1394_v38 = vmul.f32 %v2831_v54, %v3114_v40  ;;  %v1445_v27 = vmul.f32 %v2803_v57, %v3116_v30  ;;  %v1446_v11 = vmul.f32 %v2803_v57, %v3118_v26  ;;  %v1375_v21 = vld [vmem:[#allocation2 + $0x108] sm:$0xff] }
 0x399   : > { %v1560_v18 = vadd.f32 1.0, %v2370_v28  ;;  %v1409_v13 = vadd.f32 %v1393_v36, %v1304_v39  ;;  %v1062_v56 = vmul.f32 %v3021_v51, %v2786_v22  ;;  %v1063_v34 = vmul.f32 %v3023_v10, %v2786_v22 }
 0x39a   : > { %2379 = vrcp.f32 %v1559_v16  ;;  %v1410_v43 = vadd.f32 %v1394_v38, %v1305_v5  ;;  %v1461_v61 = vadd.f32 %v1445_v27, %v1357_v29  ;;  %v1462_v48 = vadd.f32 %v1446_v11, %v1358_v42  ;;  %v1376_v38 = vld [vmem:[#allocation2 + $0x110] sm:$0xff] }
 0x39b   : > { %2381 = vrcp.f32 %v1560_v18  ;;  %v1098_v9 = vmul.f32 %v3037_v47, %v2788_v33  ;;  %v1099_v3 = vmul.f32 %v3047_v63, %v2788_v33  ;;  %v1134_v6 = vmul.f32 %v3049_v0, %v2790_v37 }
 0x39c   : > { %v2372_v1 = vpop.eup %2371  ;;  %v1135_v51 = vmul.f32 %v3051_v7, %v2790_v37  ;;  %v1477_v58 = vadd.f32 %v1461_v61, %v1409_v13  ;;  %v1478_v17 = vadd.f32 %v1462_v48, %v1410_v43  ;;  %v1186_v12 = vmul.f32 %v3093_v59, %v2792_v25  ;;  %v1427_v13 = vld [vmem:[#allocation2 + $0x109] sm:$0xff] }
 0x39d   : > { %v2374_v55 = vpop.eup %2373  ;;  %v3142_v10 = vmul.f32 %v2372_v1, %v2968_v52  ;;  %v1150_v14 = vadd.f32 %v1134_v6, %v1062_v56  ;;  %v1187_v0 = vmul.f32 %v3095_v60, %v2792_v25  ;;  %v1239_v23 = vmul.f32 %v3114_v40, %v2794_v45  ;;  %v1428_v56 = vld [vmem:[#allocation2 + $0x111] sm:$0xff] }
 0x39e   : > { %v3147_v47 = vmul.f32 %v2374_v55, %v2971_v4  ;;  %v1151_v63 = vadd.f32 %v1135_v51, %v1063_v34  ;;  %v3152_v7 = vadd.f32 %v2851_v19, %v1477_v58  ;;  %v3155_v52 = vadd.f32 %v2851_v19, %v1478_v17 }
 0x39f   : > { %v1202_v44 = vadd.f32 %v1186_v12, %v1098_v9  ;;  %v1203_v41 = vadd.f32 %v1187_v0, %v1099_v3  ;;  %v1238_v4 = vmul.f32 %v3106_v15, %v2794_v45  ;;  %v1698_v39 = vadd.f32 %v1697_v46, %v3091_v53 }
 0x3a0   : > { %v2046_v20 = vpack.c.bf16 %v3147_v47, %v3142_v10  ;;  %v1985_v5 = vmul.f32 -1.442695, %v3152_v7  ;;  %v1986_v28 = vmul.f32 -1.442695, %v3155_v52  ;;  %v1290_v16 = vmul.f32 %v3116_v30, %v2796_v49 }
 0x3a1   : > { %v1254_v29 = vadd.f32 %v1238_v4, %v1150_v14  ;;  %v1255_v42 = vadd.f32 %v1239_v23, %v1151_v63  ;;  %v1291_v36 = vmul.f32 %v3118_v26, %v2796_v49  ;;  %v1343_v18 = vmul.f32 %v2798_v50, %v1323_v32 }
 0x3a2   : > { %2074 = vst [vmem:[%s2623_s22 + $0x10] sm:$0xff] %v2046_v20   ;;  %2383 = vpow2.f32 %v1985_v5  ;;  %v1306_v11 = vadd.f32 %v1290_v16, %v1202_v44  ;;  %v1344_v53 = vmul.f32 %v2798_v50, %v1324_v62  ;;  %v1395_v46 = vmul.f32 %v2831_v54, %v1375_v21  ;;  %v1325_v16 = vld [vmem:[#allocation2 + $0x127] sm:$0xff] }
 0x3a3   : > { %v2376_v27 = vpop.eup %2375  ;;  %2385 = vpow2.f32 %v1986_v28  ;;  %v1307_v61 = vadd.f32 %v1291_v36, %v1203_v41  ;;  %v1359_v48 = vadd.f32 %v1343_v18, %v1254_v29  ;;  %v1396_v3 = vmul.f32 %v2831_v54, %v1376_v38  ;;  %v1326_v29 = vld [vmem:[#allocation2 + $0x12f] sm:$0xff] }
 0x3a4   : > { %v2378_v34 = vpop.eup %2377  ;;  %v1561_v43 = vadd.f32 1.0, %v2376_v27  ;;  %v1360_v9 = vadd.f32 %v1344_v53, %v1255_v42  ;;  %v1411_v6 = vadd.f32 %v1395_v46, %v1306_v11  ;;  %v1447_v51 = vmul.f32 %v2803_v57, %v1427_v13  ;;  %v1377_v18 = vld [vmem:[#allocation2 + $0x128] sm:$0xff]  ;;  %v1378_v27 = vld [vmem:[#allocation2 + $0x130] sm:$0xff] }
 0x3a5   : > { %v1562_v1 = vadd.f32 1.0, %v2378_v34  ;;  %v1448_v55 = vmul.f32 %v2803_v57, %v1428_v56  ;;  %v1064_v58 = vmul.f32 %v3093_v59, %v2786_v22  ;;  %v1412_v12 = vadd.f32 %v1396_v3, %v1307_v61  ;;  %v1429_v11 = vld [vmem:[#allocation2 + $0x129] sm:$0xff] }
 0x3a6   : > { %2387 = vrcp.f32 %v1561_v43  ;;  %v1065_v14 = vmul.f32 %v3095_v60, %v2786_v22  ;;  %v1100_v63 = vmul.f32 %v3106_v15, %v2788_v33  ;;  %v1463_v20 = vadd.f32 %v1447_v51, %v1359_v48 }
 0x3a7   : > { %v2380_v17 = vpop.eup %2379  ;;  %2389 = vrcp.f32 %v1562_v1  ;;  %v1464_v41 = vadd.f32 %v1448_v55, %v1360_v9  ;;  %v1101_v4 = vmul.f32 %v3114_v40, %v2788_v33  ;;  %v1136_v23 = vmul.f32 %v3116_v30, %v2790_v37 }
 0x3a8   : > { %v2382_v0 = vpop.eup %2381  ;;  %v3184_v44 = vmul.f32 %v2380_v17, %v3026_v35  ;;  %v1137_v22 = vmul.f32 %v3118_v26, %v2790_v37  ;;  %v1188_v60 = vmul.f32 %v1323_v32, %v2792_v25  ;;  %v1479_v15 = vadd.f32 %v1463_v20, %v1411_v6 }
 0x3a9   : > { %v3189_v59 = vmul.f32 %v2382_v0, %v3029_v24  ;;  %v1480_v35 = vadd.f32 %v1464_v41, %v1412_v12  ;;  %v1189_v5 = vmul.f32 %v1324_v62, %v2792_v25  ;;  %v1152_v33 = vadd.f32 %v1136_v23, %v1064_v58 }
 0x3aa   : > { %v1153_v40 = vadd.f32 %v1137_v22, %v1065_v14  ;;  %v1204_v24 = vadd.f32 %v1188_v60, %v1100_v63  ;;  %v1699_v30 = vadd.f32 %v1698_v39, %v3098_v8  ;;  %v3201_v42 = vadd.f32 %v2851_v19, %v1479_v15 }
 0x3ab   : > { %v2051_v28 = vpack.c.bf16 %v3189_v59, %v3184_v44  ;;  %v3204_v37 = vadd.f32 %v2851_v19, %v1480_v35  ;;  %v1205_v26 = vadd.f32 %v1189_v5, %v1101_v4  ;;  %v1240_v25 = vmul.f32 %v1375_v21, %v2794_v45 }
 0x3ac   : > { %v1241_v32 = vmul.f32 %v1376_v38, %v2794_v45  ;;  %v1292_v62 = vmul.f32 %v1427_v13, %v2796_v49  ;;  %v1293_v36 = vmul.f32 %v1428_v56, %v2796_v49  ;;  %v1987_v8 = vmul.f32 -1.442695, %v3201_v42  ;;  %v1430_v45 = vld [vmem:[#allocation2 + $0x131] sm:$0xff] }
 0x3ad   : > { %2075 = vst [vmem:[%s2623_s22 + $0x18] sm:$0xff] %v2051_v28   ;;  %v1988_v39 = vmul.f32 -1.442695, %v3204_v37  ;;  %v1345_v53 = vmul.f32 %v2798_v50, %v1325_v16  ;;  %v1346_v46 = vmul.f32 %v2798_v50, %v1326_v29  ;;  %v1256_v34 = vadd.f32 %v1240_v25, %v1152_v33 }
 0x3ae   : > { %v1257_v43 = vadd.f32 %v1241_v32, %v1153_v40  ;;  %v1308_v21 = vadd.f32 %v1292_v62, %v1204_v24  ;;  %v1309_v61 = vadd.f32 %v1293_v36, %v1205_v26  ;;  %2391 = vpow2.f32 %v1987_v8 }
 0x3af   : > { %v2384_v38 = vpop.eup %2383  ;;  %v1397_v49 = vmul.f32 %v2831_v54, %v1377_v18  ;;  %v1398_v13 = vmul.f32 %v2831_v54, %v1378_v27  ;;  %v1449_v56 = vmul.f32 %v2803_v57, %v1429_v11  ;;  %2393 = vpow2.f32 %v1988_v39 }
 0x3b0   : > { %v2386_v48 = vpop.eup %2385  ;;  %v1563_v1 = vadd.f32 1.0, %v2384_v38  ;;  %v1361_v9 = vadd.f32 %v1345_v53, %v1256_v34  ;;  %v1362_v3 = vadd.f32 %v1346_v46, %v1257_v43  ;;  %v1450_v55 = vmul.f32 %v2803_v57, %v1430_v45 }
 0x3b1   : > { %v1564_v6 = vadd.f32 1.0, %v2386_v48  ;;  %v1413_v50 = vadd.f32 %v1397_v49, %v1308_v21  ;;  %v1414_v51 = vadd.f32 %v1398_v13, %v1309_v61  ;;  %v1700_v17 = vadd.f32 %v1699_v30, %v3142_v10 }
 0x3b2   : > { %2395 = vrcp.f32 %v1563_v1  ;;  %v1465_v12 = vadd.f32 %v1449_v56, %v1361_v9  ;;  %v1466_v54 = vadd.f32 %v1450_v55, %v1362_v3 }
 0x3b3   : > { %v2388_v58 = vpop.eup %2387  ;;  %2397 = vrcp.f32 %v1564_v6  ;;  %v1701_v4 = vadd.f32 %v1700_v17, %v3147_v47 }
 0x3b4   : > { %v2390_v14 = vpop.eup %2389  ;;  %v1609_v63 = vmul.f32 %v2388_v58, %v3083_v31  ;;  %v1481_v20 = vadd.f32 %v1465_v12, %v1413_v50  ;;  %v1482_v41 = vadd.f32 %v1466_v54, %v1414_v51 }
 0x3b5   : > { %v1610_v0 = vmul.f32 %v2390_v14, %v3086_v2  ;;  %v1702_v15 = vadd.f32 %v1701_v4, %v3184_v44 }
 0x3b6   : > { %v1503_v57 = vadd.f32 %v2851_v19, %v1481_v20  ;;  %v1504_v22 = vadd.f32 %v2851_v19, %v1482_v41 }
 0x3b7   : > { %v2056_v23 = vpack.c.bf16 %v1610_v0, %v1609_v63  ;;  %v1703_v5 = vadd.f32 %v1702_v15, %v3189_v59 }
 0x3b8   : > { %v1989_v10 = vmul.f32 -1.442695, %v1503_v57  ;;  %v1990_v60 = vmul.f32 -1.442695, %v1504_v22 }
 0x3b9   : > { %2076 = vst [vmem:[%s2623_s22 + $0x20] sm:$0xff] %v2056_v23   ;;  %v1704_v24 = vadd.f32 %v1703_v5, %v1609_v63 }
 0x3ba   : > { %2399 = vpow2.f32 %v1989_v10 }
 0x3bb   : > { %2401 = vpow2.f32 %v1990_v60  ;;  %v2392_v31 = vpop.eup %2391  ;;  %v1705_v44 = vadd.f32 %v1704_v24, %v1610_v0 }
 0x3bc   : > { %v2394_v35 = vpop.eup %2393  ;;  %v1565_v2 = vadd.f32 1.0, %v2392_v31 }
 0x3bd   : > { %v1566_v28 = vadd.f32 1.0, %v2394_v35 }
 0x3be   : > { %2403 = vrcp.f32 %v1565_v2 }
 0x3bf   : > { %v2396_v47 = vpop.eup %2395  ;;  %2405 = vrcp.f32 %v1566_v28 }
 0x3c0   : > { %v2398_v33 = vpop.eup %2397  ;;  %v1611_v19 = vmul.f32 %v2396_v47, %v3152_v7 }
 0x3c1   : > { %v1612_v40 = vmul.f32 %v2398_v33, %v3155_v52 }
 0x3c2   : > { %v1706_v32 = vadd.f32 %v1705_v44, %v1611_v19 }
 0x3c3   : > { %v2061_v16 = vpack.c.bf16 %v1612_v40, %v1611_v19 }
 0x3c4   : > { %v1707_v36 = vadd.f32 %v1706_v32, %v1612_v40 }
 0x3c5   : > { %2077 = vst [vmem:[%s2623_s22 + $0x28] sm:$0xff] %v2061_v16  }
 0x3c7   : > { %v2400_v29 = vpop.eup %2399 }
 0x3c8   : > { %v2402_v30 = vpop.eup %2401  ;;  %v1567_v26 = vadd.f32 1.0, %v2400_v29 }
 0x3c9   : > { %v1568_v25 = vadd.f32 1.0, %v2402_v30 }
 0x3ca   : > { %2407 = vrcp.f32 %v1567_v26 }
 0x3cb   : > { %2409 = vrcp.f32 %v1568_v25  ;;  %v2404_v59 = vpop.eup %2403 }
 0x3cc   : > { %v2406_v62 = vpop.eup %2405  ;;  %v1613_v7 = vmul.f32 %v2404_v59, %v3201_v42 }
 0x3cd   : > { %v1614_v52 = vmul.f32 %v2406_v62, %v3204_v37 }
 0x3ce   : > { %v1708_v27 = vadd.f32 %v1707_v36, %v1613_v7 }
 0x3cf   : > { %v2066_v18 = vpack.c.bf16 %v1614_v52, %v1613_v7 }
 0x3d0   : > { %v1709_v11 = vadd.f32 %v1708_v27, %v1614_v52 }
 0x3d1   : > { %2078 = vst [vmem:[%s2623_s22 + $0x30] sm:$0xff] %v2066_v18  }
 0x3d7   : > { %v2408_v8 = vpop.eup %2407 }
 0x3d8   : > { %v2410_v39 = vpop.eup %2409  ;;  %v1615_v53 = vmul.f32 %v2408_v8, %v1503_v57 }
 0x3d9   : > { %v1616_v46 = vmul.f32 %v2410_v39, %v1504_v22 }
 0x3da   : > { %v1710_v34 = vadd.f32 %v1709_v11, %v1615_v53 }
 0x3db   : > { %v2071_v43 = vpack.c.bf16 %v1616_v46, %v1615_v53 }
 0x3dc   : > { %v1711_v21 = vadd.f32 %v1710_v34, %v1616_v46 }
 0x3dd   : > { %2079 = vst [vmem:[%s2623_s22 + $0x38] sm:$0xff] %v2071_v43  }
 0x3de   : > { %v1712_v61 = vrot.slane %v1711_v21, 4 }
 0x3e0   : > { %v1713_v45 = vadd.f32 %v1712_v61, %v1711_v21 }
 0x3e2   : > { %v1714_v38 = vrot.slane %v1713_v45, 2 }
 0x3e4   : > { %v1715_v49 = vadd.f32 %v1714_v38, %v1713_v45 }
 0x3e6   : > { %v1716_v42 = vrot.slane %v1715_v49, 1 }
 0x3e8   : > { %v1717_v13 = vadd.f32 %v1716_v42, %v1715_v49 }
 0x3ea   : > { %1718 = vst [vmem:[%s3265_s15] sm:$0x1] %v1717_v13 }
 0x3eb PF: > { %s19_s9 = sadd.s32 1, %s2449_s9   ;;  %s3266_s27 = smov %s2441_s29 }
 0x3ec   : > { %p16_p1 = scmp.ge.s32.totalorder %s19_s9, 6   ;;  %s3267_s28 = smov %s2445_s30 }
 0x3ed   : > { %s3268_s29 = smov %s3271_s10  ;;  %s3269_s30 = smov %s3275_s11 }
 0x3ee   :  { %18 = sbr.rel (!%p16_p1) target bundleno = 3 (0x3), region = 116 }

</bundles_post_ra>
